<compile_context>
chip_gen: v7x
topology: tpu7x:2x2x1
jax: 0.10.0
libtpu: 0.0.40
codegen_flags: <defaults>
</compile_context>

<pallas_src>
import jax
import jax.numpy as jnp
import numpy as np
from jax import lax
from jax.experimental import pallas as pl
from jax.experimental.pallas import tpu as pltpu

# ---- small, module-consistent sizes -----------------------------------------
B, T = 2, 8          # batch, char-sequence length
EMB_DIM = 16         # embedding_dim
HID = 32             # hidden_dim
OUT_DIM = 40         # output_dim (character vocab size)


def _round_up(x, m):
    return ((x + m - 1) // m) * m


# ---- fused embedding + bidirectional-GRU + ReLU + FC Pallas kernel -----------
def _make_kernel(Tlen, Breal, BP, H, GW, VP, OUT):
    def kernel(tok_ref, ew_ref, whh_ref, bhn_ref, wfc_ref, bfc_ref, out_ref, h_ref):
        f32 = jnp.float32

        # ---- prologue: one-hot tokens (time-major rows, batch padded to BP) ---
        lane_v = lax.broadcasted_iota(jnp.int32, (BP, VP), 1)
        row_v = lax.broadcasted_iota(jnp.int32, (BP, VP), 0)
        neg1 = jnp.full((BP, VP), -1, jnp.int32)
        oh_blocks = []
        for t in range(Tlen):
            val = neg1
            for b in range(Breal):
                val = jnp.where(row_v == b, tok_ref[b, t], val)
            oh_blocks.append((lane_v == val).astype(f32))
        onehot = jnp.concatenate(oh_blocks, axis=0)               # [T*BP, VP]

        # Hoisted input projection for BOTH directions; embedding table and the
        # r/z-gate biases are already folded into ew_ref at pack time.
        gi = jnp.dot(onehot, ew_ref[...], preferred_element_type=f32)  # [T*BP, 3*GW]

        whh = whh_ref[...]                                        # [GW, 3*GW] block-diag
        bhn = jnp.broadcast_to(bhn_ref[...], (BP, GW))            # hoisted broadcast

        # lane masks: lanes (l mod GW) < H belong to the forward direction.
        fmask_g = (lax.broadcasted_iota(jnp.int32, (BP, 3 * GW), 1) & (GW - 1)) < H
        fmask_h = lax.broadcasted_iota(jnp.int32, (BP, GW), 1) < H

        def sig(x):  # sigmoid via one EUP tanh (no exp+recip on the serial chain)
            return 0.5 * (1.0 + jnp.tanh(0.5 * x))

        h = jnp.zeros((BP, GW), f32)          # lanes 0:H = h_fwd, H:2H = h_bwd
        hist = [None] * Tlen
        # Fully unrolled time loop; only h @ W_hh (one MXU push/step) is serial.
        for s in range(Tlen):
            sb = Tlen - 1 - s
            gi_t = jnp.where(fmask_g,
                             gi[s * BP:(s + 1) * BP, :],          # fwd: time s
                             gi[sb * BP:(sb + 1) * BP, :])        # bwd: time T-1-s
            gh = jnp.dot(h, whh, preferred_element_type=f32)      # [BP, 3*GW]
            r = sig(gi_t[:, 0:GW] + gh[:, 0:GW])
            z = sig(gi_t[:, GW:2 * GW] + gh[:, GW:2 * GW])
            n = jnp.tanh(gi_t[:, 2 * GW:3 * GW] + r * (gh[:, 2 * GW:3 * GW] + bhn))
            h = (1.0 - z) * n + z * h
            hist[s] = h

        # final hidden state [h_fwd, h_bwd] for the real batch rows
        h_ref[0] = h[0:Breal, 0:H]
        h_ref[1] = h[0:Breal, H:2 * H]

        # ---- epilogue: dropout(eval)=identity, ReLU, fc as a single dot --------
        acts = []
        for t in range(Tlen):
            # output for time t: fwd lanes from step t, bwd lanes from step T-1-t
            acts.append(jnp.where(fmask_h, hist[t], hist[Tlen - 1 - t]))
        act = jnp.maximum(jnp.concatenate(acts, axis=0), 0.0)     # [T*BP, GW]
        logits = (jnp.dot(act, wfc_ref[...], preferred_element_type=f32)
                  + bfc_ref[...])                                 # [T*BP, OUTP]
        # Emit batch-major [B, T, OUT] directly (no wrapper reshape/transpose).
        for t in range(Tlen):
            out_ref[:, t, :] = logits[t * BP:t * BP + Breal, 0:OUT]

    return kernel


def mlb_rnn_pallas(x_tokens, packed, *, H, OUT):
    Breal, Tlen = x_tokens.shape
    BP = _round_up(max(Breal, 8), 8)
    VP, GW3 = packed["emb_wih_p"].shape
    GW = GW3 // 3
    OUTP = packed["wfc_p"].shape[1]
    kernel = _make_kernel(Tlen, Breal, BP, H, GW, VP, OUT)
    grid_spec = pltpu.PrefetchScalarGridSpec(
        num_scalar_prefetch=1,                 # x_tokens -> SMEM
        grid=(1,),
        in_specs=[
            pl.BlockSpec((VP, 3 * GW), lambda i, tok: (0, 0)),   # emb @ W_ih (+bias)
            pl.BlockSpec((GW, 3 * GW), lambda i, tok: (0, 0)),   # block-diag W_hh
            pl.BlockSpec((1, GW), lambda i, tok: (0, 0)),        # b_hh_n (both dirs)
            pl.BlockSpec((GW, OUTP), lambda i, tok: (0, 0)),     # fc weight slab
            pl.BlockSpec((1, OUTP), lambda i, tok: (0, 0)),      # fc bias
        ],
        out_specs=(
            pl.BlockSpec((Breal, Tlen, OUT), lambda i, tok: (0, 0, 0)),
            pl.BlockSpec((2, Breal, H), lambda i, tok: (0, 0, 0)),
        ),
    )
    return pl.pallas_call(
        kernel,
        out_shape=(jax.ShapeDtypeStruct((Breal, Tlen, OUT), jnp.float32),  # logits
                   jax.ShapeDtypeStruct((2, Breal, H), jnp.float32)),      # h_n
        grid_spec=grid_spec,
        compiler_params=pltpu.CompilerParams(dimension_semantics=("arbitrary",)),
    )(x_tokens, packed["emb_wih_p"], packed["whh_bd"], packed["bhn"],
      packed["wfc_p"], packed["bfc_p"])


@jax.jit
def mlb_rnn_forward(packed, x_tokens):
    # Whole forward pass is a single Pallas kernel; no XLA glue ops in the wrapper.
    # TODO(synk): reference forward does torch.concat((emb, pos)) with `pos`
    # undefined (POS-tagger / Flair embeddings never computed in given code); omitted.
    # TODO(synk): dropout treated as identity (eval-mode inference semantics).
    return mlb_rnn_pallas(x_tokens, packed, H=HID, OUT=OUT_DIM)


# ---- one-time packing of raw params into the fused-kernel layout -------------
def pack_params(p):
    E, H = p["wih"].shape[2], p["wih"].shape[3]
    V = p["emb"].shape[0]
    OUT = p["w_fc"].shape[1]
    GW = _round_up(2 * H, 128)                 # per-gate slab width (fwd|bwd|pad)
    VP = _round_up(V, 128)
    OUTP = _round_up(OUT, 128)

    wih = np.asarray(p["wih"], np.float32)     # [2, 3, E, H]
    whh = np.asarray(p["whh"], np.float32)     # [2, 3, H, H]
    bih = np.asarray(p["bih"], np.float32)[:, :, 0, :]   # [2, 3, H]
    bhh = np.asarray(p["bhh"], np.float32)[:, :, 0, :]   # [2, 3, H]
    emb = np.asarray(p["emb"], np.float32)     # [V, E]
    wfc = np.asarray(p["w_fc"], np.float32)    # [2H, OUT]
    bfc = np.asarray(p["b_fc"], np.float32)    # [1, OUT]

    # Input->gate projection; per gate slab: lanes 0:H fwd, H:2H bwd, rest zero.
    wih_p = np.zeros((E, 3 * GW), np.float32)
    bgi = np.zeros((1, 3 * GW), np.float32)
    for g in range(3):
        wih_p[:, g * GW:g * GW + H] = wih[0, g]
        wih_p[:, g * GW + H:g * GW + 2 * H] = wih[1, g]
        for d in range(2):
            # r,z gates: fold b_ih + b_hh; n gate: b_ih only (b_hh_n applied in-cell).
            bb = bih[d, g] + (bhh[d, g] if g < 2 else 0.0)
            bgi[0, g * GW + d * H:g * GW + (d + 1) * H] = bb

    # Fuse embedding into the projection (one-hot @ (emb @ W_ih) == emb[tok] @ W_ih)
    # and fold the gi biases into every vocab row.
    emb_wih = emb @ wih_p + bgi
    emb_wih_p = np.zeros((VP, 3 * GW), np.float32)
    emb_wih_p[:V] = emb_wih

    # Block-diagonal recurrent weights: row lanes 0:H = h_fwd, H:2H = h_bwd.
    whh_bd = np.zeros((GW, 3 * GW), np.float32)
    for g in range(3):
        whh_bd[0:H, g * GW:g * GW + H] = whh[0, g]
        whh_bd[H:2 * H, g * GW + H:g * GW + 2 * H] = whh[1, g]

    bhn = np.zeros((1, GW), np.float32)        # b_hh_n, both directions
    bhn[0, 0:H] = bhh[0, 2]
    bhn[0, H:2 * H] = bhh[1, 2]

    # fc packed onto the h layout (rows 0:H fwd, H:2H bwd, rest zero); lane-padded out.
    wfc_p = np.zeros((GW, OUTP), np.float32)
    wfc_p[0:H, 0:OUT] = wfc[0:H]
    wfc_p[H:2 * H, 0:OUT] = wfc[H:2 * H]
    bfc_p = np.zeros((1, OUTP), np.float32)
    bfc_p[0, 0:OUT] = bfc[0]

    return {
        "emb_wih_p": jnp.asarray(emb_wih_p),
        "whh_bd": jnp.asarray(whh_bd),
        "bhn": jnp.asarray(bhn),
        "wfc_p": jnp.asarray(wfc_p),
        "bfc_p": jnp.asarray(bfc_p),
    }


# ---- pure-JAX reference for validation ---------------------------------------
def gru_ref(x_tbe, wih, whh, bih, bhh):
    H = whh.shape[-1]

    def direction(xs, d):
        def step(h, xt):
            gi_r = xt @ wih[d, 0] + bih[d, 0]
            gh_r = h @ whh[d, 0] + bhh[d, 0]
            gi_z = xt @ wih[d, 1] + bih[d, 1]
            gh_z = h @ whh[d, 1] + bhh[d, 1]
            gi_n = xt @ wih[d, 2] + bih[d, 2]
            gh_n = h @ whh[d, 2] + bhh[d, 2]
            r = jax.nn.sigmoid(gi_r + gh_r)
            z = jax.nn.sigmoid(gi_z + gh_z)
            n = jnp.tanh(gi_n + r * gh_n)
            hn = (1.0 - z) * n + z * h
            return hn, hn

        h0 = jnp.zeros((xs.shape[1], H), jnp.float32)
        h_last, hs = lax.scan(step, h0, xs)
        return hs, h_last

    hs_f, hf = direction(x_tbe, 0)
    hs_b_rev, hb = direction(x_tbe[::-1], 1)
    return hs_f, hs_b_rev[::-1], jnp.stack([hf, hb])


def ref_forward(params, x_tokens):
    emb = jnp.take(params["emb"], x_tokens, axis=0)
    x_tbe = jnp.transpose(emb, (1, 0, 2))
    hs_f, hs_b, h_n = gru_ref(x_tbe, params["wih"], params["whh"],
                              params["bih"], params["bhh"])
    out = jnp.transpose(jnp.concatenate([hs_f, hs_b], -1), (1, 0, 2))
    logits = jnp.maximum(out, 0.0) @ params["w_fc"] + params["b_fc"]
    return logits, h_n


def init_params(key):
    ks = jax.random.split(key, 6)
    s = 0.1
    return {
        "emb":  s * jax.random.normal(ks[0], (OUT_DIM, EMB_DIM), jnp.float32),
        "wih":  s * jax.random.normal(ks[1], (2, 3, EMB_DIM, HID), jnp.float32),
        "whh":  s * jax.random.normal(ks[2], (2, 3, HID, HID), jnp.float32),
        "bih":  s * jax.random.normal(ks[3], (2, 3, 1, HID), jnp.float32),
        "bhh":  s * jax.random.normal(ks[4], (2, 3, 1, HID), jnp.float32),
        "w_fc": s * jax.random.normal(ks[5], (2 * HID, OUT_DIM), jnp.float32),
        "b_fc": jnp.zeros((1, OUT_DIM), jnp.float32),
    }


if __name__ == "__main__":
    key = jax.random.PRNGKey(0)
    kp, kx = jax.random.split(key)
    params = init_params(kp)
    packed = pack_params(params)
    x_tokens = jax.random.randint(kx, (B, T), 0, OUT_DIM, jnp.int32)

    out, h_n = jax.block_until_ready(mlb_rnn_forward(packed, x_tokens))
    ref_out, ref_h = ref_forward(params, x_tokens)

    np.testing.assert_allclose(np.asarray(out), np.asarray(ref_out), rtol=1e-3, atol=1e-3)
    np.testing.assert_allclose(np.asarray(h_n), np.asarray(ref_h), rtol=1e-3, atol=1e-3)
    assert out.shape == (B, T, OUT_DIM) and h_n.shape == (2, B, HID)
    print("KERNEL_OK")
</pallas_src>

<mosaic_0001>
module attributes {stable_mosaic.version = 11 : i64} {
  func.func @kernel(%arg0: i32, %arg1: memref<2x8xi32, #tpu.memory_space<smem>>, %arg2: memref<128x384xf32, #tpu.memory_space<vmem>>, %arg3: memref<128x384xf32, #tpu.memory_space<vmem>>, %arg4: memref<1x128xf32, #tpu.memory_space<vmem>>, %arg5: memref<128x128xf32, #tpu.memory_space<vmem>>, %arg6: memref<1x128xf32, #tpu.memory_space<vmem>>, %arg7: memref<2x8x40xf32, #tpu.memory_space<vmem>>, %arg8: memref<2x2x32xf32, #tpu.memory_space<vmem>>) attributes {dimension_semantics = [#tpu.dimension_semantics<arbitrary>], iteration_bounds = array<i64: 1>, scalar_prefetch = 1 : i64, scratch_operands = 0 : i64, tpu.core_type = #tpu.core_type<tc>, window_params = [{pipeline_mode = #tpu.pipeline_mode<synchronous>, transform_indices = @transform_0, window_bounds = array<i64: 128, 384>}, {pipeline_mode = #tpu.pipeline_mode<synchronous>, transform_indices = @transform_1, window_bounds = array<i64: 128, 384>}, {pipeline_mode = #tpu.pipeline_mode<synchronous>, transform_indices = @transform_2, window_bounds = array<i64: 1, 128>}, {pipeline_mode = #tpu.pipeline_mode<synchronous>, transform_indices = @transform_3, window_bounds = array<i64: 128, 128>}, {pipeline_mode = #tpu.pipeline_mode<synchronous>, transform_indices = @transform_4, window_bounds = array<i64: 1, 128>}, {pipeline_mode = #tpu.pipeline_mode<synchronous>, transform_indices = @transform_5, window_bounds = array<i64: 2, 8, 40>}, {pipeline_mode = #tpu.pipeline_mode<synchronous>, transform_indices = @transform_6, window_bounds = array<i64: 2, 2, 32>}]} {
    %0 = tpu.iota {dimensions = array<i32: 1>} : vector<8x128xi32>
    %1 = tpu.iota {dimensions = array<i32: 0>} : vector<8x128xi32>
    %c-1_i32 = arith.constant -1 : i32
    %2 = vector.broadcast %c-1_i32 : i32 to vector<8x128xi32>
    %c0_i32 = arith.constant 0 : i32
    %3 = vector.broadcast %c0_i32 : i32 to vector<8x128xi32>
    %4 = arith.cmpi eq, %1, %3 : vector<8x128xi32>
    %c0 = arith.constant 0 : index
    %c0_0 = arith.constant 0 : index
    %5 = memref.load %arg1[%c0, %c0_0] : memref<2x8xi32, #tpu.memory_space<smem>>
    %6 = vector.broadcast %5 : i32 to vector<8x128xi32>
    %7 = arith.select %4, %6, %2 : vector<8x128xi1>, vector<8x128xi32>
    %c1_i32 = arith.constant 1 : i32
    %8 = vector.broadcast %c1_i32 : i32 to vector<8x128xi32>
    %9 = arith.cmpi eq, %1, %8 : vector<8x128xi32>
    %c1 = arith.constant 1 : index
    %c0_1 = arith.constant 0 : index
    %10 = memref.load %arg1[%c1, %c0_1] : memref<2x8xi32, #tpu.memory_space<smem>>
    %11 = vector.broadcast %10 : i32 to vector<8x128xi32>
    %12 = arith.select %9, %11, %7 : vector<8x128xi1>, vector<8x128xi32>
    %13 = arith.cmpi eq, %0, %12 : vector<8x128xi32>
    %14 = arith.extui %13 : vector<8x128xi1> to vector<8x128xi32>
    %15 = arith.sitofp %14 : vector<8x128xi32> to vector<8x128xf32>
    %c0_i32_2 = arith.constant 0 : i32
    %16 = vector.broadcast %c0_i32_2 : i32 to vector<8x128xi32>
    %17 = arith.cmpi eq, %1, %16 : vector<8x128xi32>
    %c0_3 = arith.constant 0 : index
    %c1_4 = arith.constant 1 : index
    %18 = memref.load %arg1[%c0_3, %c1_4] : memref<2x8xi32, #tpu.memory_space<smem>>
    %19 = vector.broadcast %18 : i32 to vector<8x128xi32>
    %20 = arith.select %17, %19, %2 : vector<8x128xi1>, vector<8x128xi32>
    %c1_i32_5 = arith.constant 1 : i32
    %21 = vector.broadcast %c1_i32_5 : i32 to vector<8x128xi32>
    %22 = arith.cmpi eq, %1, %21 : vector<8x128xi32>
    %c1_6 = arith.constant 1 : index
    %c1_7 = arith.constant 1 : index
    %23 = memref.load %arg1[%c1_6, %c1_7] : memref<2x8xi32, #tpu.memory_space<smem>>
    %24 = vector.broadcast %23 : i32 to vector<8x128xi32>
    %25 = arith.select %22, %24, %20 : vector<8x128xi1>, vector<8x128xi32>
    %26 = arith.cmpi eq, %0, %25 : vector<8x128xi32>
    %27 = arith.extui %26 : vector<8x128xi1> to vector<8x128xi32>
    %28 = arith.sitofp %27 : vector<8x128xi32> to vector<8x128xf32>
    %c0_i32_8 = arith.constant 0 : i32
    %29 = vector.broadcast %c0_i32_8 : i32 to vector<8x128xi32>
    %30 = arith.cmpi eq, %1, %29 : vector<8x128xi32>
    %c0_9 = arith.constant 0 : index
    %c2 = arith.constant 2 : index
    %31 = memref.load %arg1[%c0_9, %c2] : memref<2x8xi32, #tpu.memory_space<smem>>
    %32 = vector.broadcast %31 : i32 to vector<8x128xi32>
    %33 = arith.select %30, %32, %2 : vector<8x128xi1>, vector<8x128xi32>
    %c1_i32_10 = arith.constant 1 : i32
    %34 = vector.broadcast %c1_i32_10 : i32 to vector<8x128xi32>
    %35 = arith.cmpi eq, %1, %34 : vector<8x128xi32>
    %c1_11 = arith.constant 1 : index
    %c2_12 = arith.constant 2 : index
    %36 = memref.load %arg1[%c1_11, %c2_12] : memref<2x8xi32, #tpu.memory_space<smem>>
    %37 = vector.broadcast %36 : i32 to vector<8x128xi32>
    %38 = arith.select %35, %37, %33 : vector<8x128xi1>, vector<8x128xi32>
    %39 = arith.cmpi eq, %0, %38 : vector<8x128xi32>
    %40 = arith.extui %39 : vector<8x128xi1> to vector<8x128xi32>
    %41 = arith.sitofp %40 : vector<8x128xi32> to vector<8x128xf32>
    %c0_i32_13 = arith.constant 0 : i32
    %42 = vector.broadcast %c0_i32_13 : i32 to vector<8x128xi32>
    %43 = arith.cmpi eq, %1, %42 : vector<8x128xi32>
    %c0_14 = arith.constant 0 : index
    %c3 = arith.constant 3 : index
    %44 = memref.load %arg1[%c0_14, %c3] : memref<2x8xi32, #tpu.memory_space<smem>>
    %45 = vector.broadcast %44 : i32 to vector<8x128xi32>
    %46 = arith.select %43, %45, %2 : vector<8x128xi1>, vector<8x128xi32>
    %c1_i32_15 = arith.constant 1 : i32
    %47 = vector.broadcast %c1_i32_15 : i32 to vector<8x128xi32>
    %48 = arith.cmpi eq, %1, %47 : vector<8x128xi32>
    %c1_16 = arith.constant 1 : index
    %c3_17 = arith.constant 3 : index
    %49 = memref.load %arg1[%c1_16, %c3_17] : memref<2x8xi32, #tpu.memory_space<smem>>
    %50 = vector.broadcast %49 : i32 to vector<8x128xi32>
    %51 = arith.select %48, %50, %46 : vector<8x128xi1>, vector<8x128xi32>
    %52 = arith.cmpi eq, %0, %51 : vector<8x128xi32>
    %53 = arith.extui %52 : vector<8x128xi1> to vector<8x128xi32>
    %54 = arith.sitofp %53 : vector<8x128xi32> to vector<8x128xf32>
    %c0_i32_18 = arith.constant 0 : i32
    %55 = vector.broadcast %c0_i32_18 : i32 to vector<8x128xi32>
    %56 = arith.cmpi eq, %1, %55 : vector<8x128xi32>
    %c0_19 = arith.constant 0 : index
    %c4 = arith.constant 4 : index
    %57 = memref.load %arg1[%c0_19, %c4] : memref<2x8xi32, #tpu.memory_space<smem>>
    %58 = vector.broadcast %57 : i32 to vector<8x128xi32>
    %59 = arith.select %56, %58, %2 : vector<8x128xi1>, vector<8x128xi32>
    %c1_i32_20 = arith.constant 1 : i32
    %60 = vector.broadcast %c1_i32_20 : i32 to vector<8x128xi32>
    %61 = arith.cmpi eq, %1, %60 : vector<8x128xi32>
    %c1_21 = arith.constant 1 : index
    %c4_22 = arith.constant 4 : index
    %62 = memref.load %arg1[%c1_21, %c4_22] : memref<2x8xi32, #tpu.memory_space<smem>>
    %63 = vector.broadcast %62 : i32 to vector<8x128xi32>
    %64 = arith.select %61, %63, %59 : vector<8x128xi1>, vector<8x128xi32>
    %65 = arith.cmpi eq, %0, %64 : vector<8x128xi32>
    %66 = arith.extui %65 : vector<8x128xi1> to vector<8x128xi32>
    %67 = arith.sitofp %66 : vector<8x128xi32> to vector<8x128xf32>
    %c0_i32_23 = arith.constant 0 : i32
    %68 = vector.broadcast %c0_i32_23 : i32 to vector<8x128xi32>
    %69 = arith.cmpi eq, %1, %68 : vector<8x128xi32>
    %c0_24 = arith.constant 0 : index
    %c5 = arith.constant 5 : index
    %70 = memref.load %arg1[%c0_24, %c5] : memref<2x8xi32, #tpu.memory_space<smem>>
    %71 = vector.broadcast %70 : i32 to vector<8x128xi32>
    %72 = arith.select %69, %71, %2 : vector<8x128xi1>, vector<8x128xi32>
    %c1_i32_25 = arith.constant 1 : i32
    %73 = vector.broadcast %c1_i32_25 : i32 to vector<8x128xi32>
    %74 = arith.cmpi eq, %1, %73 : vector<8x128xi32>
    %c1_26 = arith.constant 1 : index
    %c5_27 = arith.constant 5 : index
    %75 = memref.load %arg1[%c1_26, %c5_27] : memref<2x8xi32, #tpu.memory_space<smem>>
    %76 = vector.broadcast %75 : i32 to vector<8x128xi32>
    %77 = arith.select %74, %76, %72 : vector<8x128xi1>, vector<8x128xi32>
    %78 = arith.cmpi eq, %0, %77 : vector<8x128xi32>
    %79 = arith.extui %78 : vector<8x128xi1> to vector<8x128xi32>
    %80 = arith.sitofp %79 : vector<8x128xi32> to vector<8x128xf32>
    %c0_i32_28 = arith.constant 0 : i32
    %81 = vector.broadcast %c0_i32_28 : i32 to vector<8x128xi32>
    %82 = arith.cmpi eq, %1, %81 : vector<8x128xi32>
    %c0_29 = arith.constant 0 : index
    %c6 = arith.constant 6 : index
    %83 = memref.load %arg1[%c0_29, %c6] : memref<2x8xi32, #tpu.memory_space<smem>>
    %84 = vector.broadcast %83 : i32 to vector<8x128xi32>
    %85 = arith.select %82, %84, %2 : vector<8x128xi1>, vector<8x128xi32>
    %c1_i32_30 = arith.constant 1 : i32
    %86 = vector.broadcast %c1_i32_30 : i32 to vector<8x128xi32>
    %87 = arith.cmpi eq, %1, %86 : vector<8x128xi32>
    %c1_31 = arith.constant 1 : index
    %c6_32 = arith.constant 6 : index
    %88 = memref.load %arg1[%c1_31, %c6_32] : memref<2x8xi32, #tpu.memory_space<smem>>
    %89 = vector.broadcast %88 : i32 to vector<8x128xi32>
    %90 = arith.select %87, %89, %85 : vector<8x128xi1>, vector<8x128xi32>
    %91 = arith.cmpi eq, %0, %90 : vector<8x128xi32>
    %92 = arith.extui %91 : vector<8x128xi1> to vector<8x128xi32>
    %93 = arith.sitofp %92 : vector<8x128xi32> to vector<8x128xf32>
    %c0_i32_33 = arith.constant 0 : i32
    %94 = vector.broadcast %c0_i32_33 : i32 to vector<8x128xi32>
    %95 = arith.cmpi eq, %1, %94 : vector<8x128xi32>
    %c0_34 = arith.constant 0 : index
    %c7 = arith.constant 7 : index
    %96 = memref.load %arg1[%c0_34, %c7] : memref<2x8xi32, #tpu.memory_space<smem>>
    %97 = vector.broadcast %96 : i32 to vector<8x128xi32>
    %98 = arith.select %95, %97, %2 : vector<8x128xi1>, vector<8x128xi32>
    %c1_i32_35 = arith.constant 1 : i32
    %99 = vector.broadcast %c1_i32_35 : i32 to vector<8x128xi32>
    %100 = arith.cmpi eq, %1, %99 : vector<8x128xi32>
    %c1_36 = arith.constant 1 : index
    %c7_37 = arith.constant 7 : index
    %101 = memref.load %arg1[%c1_36, %c7_37] : memref<2x8xi32, #tpu.memory_space<smem>>
    %102 = vector.broadcast %101 : i32 to vector<8x128xi32>
    %103 = arith.select %100, %102, %98 : vector<8x128xi1>, vector<8x128xi32>
    %104 = arith.cmpi eq, %0, %103 : vector<8x128xi32>
    %105 = arith.extui %104 : vector<8x128xi1> to vector<8x128xi32>
    %106 = arith.sitofp %105 : vector<8x128xi32> to vector<8x128xf32>
    %107 = tpu.concatenate %15, %28, %41, %54, %67, %80, %93, %106 in 0 : vector<8x128xf32>, vector<8x128xf32>, vector<8x128xf32>, vector<8x128xf32>, vector<8x128xf32>, vector<8x128xf32>, vector<8x128xf32>, vector<8x128xf32> -> vector<64x128xf32>
    %c0_38 = arith.constant 0 : index
    %c0_39 = arith.constant 0 : index
    %108 = vector.load %arg2[%c0_38, %c0_39] : memref<128x384xf32, #tpu.memory_space<vmem>>, vector<128x384xf32>
    %cst = arith.constant dense<0.000000e+00> : vector<64x384xf32>
    %109 = tpu.matmul %107, %108, %cst {dimension_numbers = #tpu.dot_dimension_numbers<[1], [0], [0], [1], [0, 0, 1, 1], [], []>} : vector<64x128xf32>, vector<128x384xf32>, vector<64x384xf32> -> vector<64x384xf32>
    %c0_40 = arith.constant 0 : index
    %c0_41 = arith.constant 0 : index
    %110 = vector.load %arg3[%c0_40, %c0_41] : memref<128x384xf32, #tpu.memory_space<vmem>>, vector<128x384xf32>
    %c0_42 = arith.constant 0 : index
    %c0_43 = arith.constant 0 : index
    %111 = vector.load %arg4[%c0_42, %c0_43] : memref<1x128xf32, #tpu.memory_space<vmem>>, vector<1x128xf32>
    %112 = vector.shape_cast %111 : vector<1x128xf32> to vector<1x128xf32>
    %113 = vector.broadcast %112 : vector<1x128xf32> to vector<8x128xf32>
    %114 = tpu.iota {dimensions = array<i32: 1>} : vector<8x384xi32>
    %c127_i32 = arith.constant 127 : i32
    %115 = vector.broadcast %c127_i32 : i32 to vector<8x384xi32>
    %116 = arith.andi %114, %115 : vector<8x384xi32>
    %c32_i32 = arith.constant 32 : i32
    %117 = vector.broadcast %c32_i32 : i32 to vector<8x384xi32>
    %118 = arith.cmpi slt, %116, %117 : vector<8x384xi32>
    %119 = tpu.iota {dimensions = array<i32: 1>} : vector<8x128xi32>
    %c32_i32_44 = arith.constant 32 : i32
    %120 = vector.broadcast %c32_i32_44 : i32 to vector<8x128xi32>
    %121 = arith.cmpi slt, %119, %120 : vector<8x128xi32>
    %cst_45 = arith.constant 0.000000e+00 : f32
    %122 = vector.broadcast %cst_45 : f32 to vector<8x128xf32>
    %123 = vector.extract_strided_slice %109 {offsets = [0, 0], sizes = [8, 384], strides = [1, 1]} : vector<64x384xf32> to vector<8x384xf32>
    %124 = vector.extract_strided_slice %109 {offsets = [56, 0], sizes = [8, 384], strides = [1, 1]} : vector<64x384xf32> to vector<8x384xf32>
    %125 = arith.select %118, %123, %124 : vector<8x384xi1>, vector<8x384xf32>
    %cst_46 = arith.constant dense<0.000000e+00> : vector<8x384xf32>
    %126 = tpu.matmul %122, %110, %cst_46 {dimension_numbers = #tpu.dot_dimension_numbers<[1], [0], [0], [1], [0, 0, 1, 1], [], []>} : vector<8x128xf32>, vector<128x384xf32>, vector<8x384xf32> -> vector<8x384xf32>
    %127 = vector.extract_strided_slice %125 {offsets = [0, 0], sizes = [8, 128], strides = [1, 1]} : vector<8x384xf32> to vector<8x128xf32>
    %128 = vector.extract_strided_slice %126 {offsets = [0, 0], sizes = [8, 128], strides = [1, 1]} : vector<8x384xf32> to vector<8x128xf32>
    %129 = arith.addf %127, %128 : vector<8x128xf32>
    %cst_47 = arith.constant 5.000000e-01 : f32
    %130 = vector.broadcast %cst_47 : f32 to vector<8x128xf32>
    %131 = arith.mulf %130, %129 : vector<8x128xf32>
    %132 = math.tanh %131 : vector<8x128xf32>
    %cst_48 = arith.constant 1.000000e+00 : f32
    %133 = vector.broadcast %cst_48 : f32 to vector<8x128xf32>
    %134 = arith.addf %133, %132 : vector<8x128xf32>
    %cst_49 = arith.constant 5.000000e-01 : f32
    %135 = vector.broadcast %cst_49 : f32 to vector<8x128xf32>
    %136 = arith.mulf %135, %134 : vector<8x128xf32>
    %137 = vector.extract_strided_slice %125 {offsets = [0, 128], sizes = [8, 128], strides = [1, 1]} : vector<8x384xf32> to vector<8x128xf32>
    %138 = vector.extract_strided_slice %126 {offsets = [0, 128], sizes = [8, 128], strides = [1, 1]} : vector<8x384xf32> to vector<8x128xf32>
    %139 = arith.addf %137, %138 : vector<8x128xf32>
    %cst_50 = arith.constant 5.000000e-01 : f32
    %140 = vector.broadcast %cst_50 : f32 to vector<8x128xf32>
    %141 = arith.mulf %140, %139 : vector<8x128xf32>
    %142 = math.tanh %141 : vector<8x128xf32>
    %cst_51 = arith.constant 1.000000e+00 : f32
    %143 = vector.broadcast %cst_51 : f32 to vector<8x128xf32>
    %144 = arith.addf %143, %142 : vector<8x128xf32>
    %cst_52 = arith.constant 5.000000e-01 : f32
    %145 = vector.broadcast %cst_52 : f32 to vector<8x128xf32>
    %146 = arith.mulf %145, %144 : vector<8x128xf32>
    %147 = vector.extract_strided_slice %125 {offsets = [0, 256], sizes = [8, 128], strides = [1, 1]} : vector<8x384xf32> to vector<8x128xf32>
    %148 = vector.extract_strided_slice %126 {offsets = [0, 256], sizes = [8, 128], strides = [1, 1]} : vector<8x384xf32> to vector<8x128xf32>
    %149 = arith.addf %148, %113 : vector<8x128xf32>
    %150 = arith.mulf %136, %149 : vector<8x128xf32>
    %151 = arith.addf %147, %150 : vector<8x128xf32>
    %152 = math.tanh %151 : vector<8x128xf32>
    %cst_53 = arith.constant 1.000000e+00 : f32
    %153 = vector.broadcast %cst_53 : f32 to vector<8x128xf32>
    %154 = arith.subf %153, %146 : vector<8x128xf32>
    %155 = arith.mulf %154, %152 : vector<8x128xf32>
    %156 = arith.mulf %146, %122 : vector<8x128xf32>
    %157 = arith.addf %155, %156 : vector<8x128xf32>
    %158 = vector.extract_strided_slice %109 {offsets = [8, 0], sizes = [8, 384], strides = [1, 1]} : vector<64x384xf32> to vector<8x384xf32>
    %159 = vector.extract_strided_slice %109 {offsets = [48, 0], sizes = [8, 384], strides = [1, 1]} : vector<64x384xf32> to vector<8x384xf32>
    %160 = arith.select %118, %158, %159 : vector<8x384xi1>, vector<8x384xf32>
    %cst_54 = arith.constant dense<0.000000e+00> : vector<8x384xf32>
    %161 = tpu.matmul %157, %110, %cst_54 {dimension_numbers = #tpu.dot_dimension_numbers<[1], [0], [0], [1], [0, 0, 1, 1], [], []>} : vector<8x128xf32>, vector<128x384xf32>, vector<8x384xf32> -> vector<8x384xf32>
    %162 = vector.extract_strided_slice %160 {offsets = [0, 0], sizes = [8, 128], strides = [1, 1]} : vector<8x384xf32> to vector<8x128xf32>
    %163 = vector.extract_strided_slice %161 {offsets = [0, 0], sizes = [8, 128], strides = [1, 1]} : vector<8x384xf32> to vector<8x128xf32>
    %164 = arith.addf %162, %163 : vector<8x128xf32>
    %cst_55 = arith.constant 5.000000e-01 : f32
    %165 = vector.broadcast %cst_55 : f32 to vector<8x128xf32>
    %166 = arith.mulf %165, %164 : vector<8x128xf32>
    %167 = math.tanh %166 : vector<8x128xf32>
    %cst_56 = arith.constant 1.000000e+00 : f32
    %168 = vector.broadcast %cst_56 : f32 to vector<8x128xf32>
    %169 = arith.addf %168, %167 : vector<8x128xf32>
    %cst_57 = arith.constant 5.000000e-01 : f32
    %170 = vector.broadcast %cst_57 : f32 to vector<8x128xf32>
    %171 = arith.mulf %170, %169 : vector<8x128xf32>
    %172 = vector.extract_strided_slice %160 {offsets = [0, 128], sizes = [8, 128], strides = [1, 1]} : vector<8x384xf32> to vector<8x128xf32>
    %173 = vector.extract_strided_slice %161 {offsets = [0, 128], sizes = [8, 128], strides = [1, 1]} : vector<8x384xf32> to vector<8x128xf32>
    %174 = arith.addf %172, %173 : vector<8x128xf32>
    %cst_58 = arith.constant 5.000000e-01 : f32
    %175 = vector.broadcast %cst_58 : f32 to vector<8x128xf32>
    %176 = arith.mulf %175, %174 : vector<8x128xf32>
    %177 = math.tanh %176 : vector<8x128xf32>
    %cst_59 = arith.constant 1.000000e+00 : f32
    %178 = vector.broadcast %cst_59 : f32 to vector<8x128xf32>
    %179 = arith.addf %178, %177 : vector<8x128xf32>
    %cst_60 = arith.constant 5.000000e-01 : f32
    %180 = vector.broadcast %cst_60 : f32 to vector<8x128xf32>
    %181 = arith.mulf %180, %179 : vector<8x128xf32>
    %182 = vector.extract_strided_slice %160 {offsets = [0, 256], sizes = [8, 128], strides = [1, 1]} : vector<8x384xf32> to vector<8x128xf32>
    %183 = vector.extract_strided_slice %161 {offsets = [0, 256], sizes = [8, 128], strides = [1, 1]} : vector<8x384xf32> to vector<8x128xf32>
    %184 = arith.addf %183, %113 : vector<8x128xf32>
    %185 = arith.mulf %171, %184 : vector<8x128xf32>
    %186 = arith.addf %182, %185 : vector<8x128xf32>
    %187 = math.tanh %186 : vector<8x128xf32>
    %cst_61 = arith.constant 1.000000e+00 : f32
    %188 = vector.broadcast %cst_61 : f32 to vector<8x128xf32>
    %189 = arith.subf %188, %181 : vector<8x128xf32>
    %190 = arith.mulf %189, %187 : vector<8x128xf32>
    %191 = arith.mulf %181, %157 : vector<8x128xf32>
    %192 = arith.addf %190, %191 : vector<8x128xf32>
    %193 = vector.extract_strided_slice %109 {offsets = [16, 0], sizes = [8, 384], strides = [1, 1]} : vector<64x384xf32> to vector<8x384xf32>
    %194 = vector.extract_strided_slice %109 {offsets = [40, 0], sizes = [8, 384], strides = [1, 1]} : vector<64x384xf32> to vector<8x384xf32>
    %195 = arith.select %118, %193, %194 : vector<8x384xi1>, vector<8x384xf32>
    %cst_62 = arith.constant dense<0.000000e+00> : vector<8x384xf32>
    %196 = tpu.matmul %192, %110, %cst_62 {dimension_numbers = #tpu.dot_dimension_numbers<[1], [0], [0], [1], [0, 0, 1, 1], [], []>} : vector<8x128xf32>, vector<128x384xf32>, vector<8x384xf32> -> vector<8x384xf32>
    %197 = vector.extract_strided_slice %195 {offsets = [0, 0], sizes = [8, 128], strides = [1, 1]} : vector<8x384xf32> to vector<8x128xf32>
    %198 = vector.extract_strided_slice %196 {offsets = [0, 0], sizes = [8, 128], strides = [1, 1]} : vector<8x384xf32> to vector<8x128xf32>
    %199 = arith.addf %197, %198 : vector<8x128xf32>
    %cst_63 = arith.constant 5.000000e-01 : f32
    %200 = vector.broadcast %cst_63 : f32 to vector<8x128xf32>
    %201 = arith.mulf %200, %199 : vector<8x128xf32>
    %202 = math.tanh %201 : vector<8x128xf32>
    %cst_64 = arith.constant 1.000000e+00 : f32
    %203 = vector.broadcast %cst_64 : f32 to vector<8x128xf32>
    %204 = arith.addf %203, %202 : vector<8x128xf32>
    %cst_65 = arith.constant 5.000000e-01 : f32
    %205 = vector.broadcast %cst_65 : f32 to vector<8x128xf32>
    %206 = arith.mulf %205, %204 : vector<8x128xf32>
    %207 = vector.extract_strided_slice %195 {offsets = [0, 128], sizes = [8, 128], strides = [1, 1]} : vector<8x384xf32> to vector<8x128xf32>
    %208 = vector.extract_strided_slice %196 {offsets = [0, 128], sizes = [8, 128], strides = [1, 1]} : vector<8x384xf32> to vector<8x128xf32>
    %209 = arith.addf %207, %208 : vector<8x128xf32>
    %cst_66 = arith.constant 5.000000e-01 : f32
    %210 = vector.broadcast %cst_66 : f32 to vector<8x128xf32>
    %211 = arith.mulf %210, %209 : vector<8x128xf32>
    %212 = math.tanh %211 : vector<8x128xf32>
    %cst_67 = arith.constant 1.000000e+00 : f32
    %213 = vector.broadcast %cst_67 : f32 to vector<8x128xf32>
    %214 = arith.addf %213, %212 : vector<8x128xf32>
    %cst_68 = arith.constant 5.000000e-01 : f32
    %215 = vector.broadcast %cst_68 : f32 to vector<8x128xf32>
    %216 = arith.mulf %215, %214 : vector<8x128xf32>
    %217 = vector.extract_strided_slice %195 {offsets = [0, 256], sizes = [8, 128], strides = [1, 1]} : vector<8x384xf32> to vector<8x128xf32>
    %218 = vector.extract_strided_slice %196 {offsets = [0, 256], sizes = [8, 128], strides = [1, 1]} : vector<8x384xf32> to vector<8x128xf32>
    %219 = arith.addf %218, %113 : vector<8x128xf32>
    %220 = arith.mulf %206, %219 : vector<8x128xf32>
    %221 = arith.addf %217, %220 : vector<8x128xf32>
    %222 = math.tanh %221 : vector<8x128xf32>
    %cst_69 = arith.constant 1.000000e+00 : f32
    %223 = vector.broadcast %cst_69 : f32 to vector<8x128xf32>
    %224 = arith.subf %223, %216 : vector<8x128xf32>
    %225 = arith.mulf %224, %222 : vector<8x128xf32>
    %226 = arith.mulf %216, %192 : vector<8x128xf32>
    %227 = arith.addf %225, %226 : vector<8x128xf32>
    %228 = vector.extract_strided_slice %109 {offsets = [24, 0], sizes = [8, 384], strides = [1, 1]} : vector<64x384xf32> to vector<8x384xf32>
    %229 = vector.extract_strided_slice %109 {offsets = [32, 0], sizes = [8, 384], strides = [1, 1]} : vector<64x384xf32> to vector<8x384xf32>
    %230 = arith.select %118, %228, %229 : vector<8x384xi1>, vector<8x384xf32>
    %cst_70 = arith.constant dense<0.000000e+00> : vector<8x384xf32>
    %231 = tpu.matmul %227, %110, %cst_70 {dimension_numbers = #tpu.dot_dimension_numbers<[1], [0], [0], [1], [0, 0, 1, 1], [], []>} : vector<8x128xf32>, vector<128x384xf32>, vector<8x384xf32> -> vector<8x384xf32>
    %232 = vector.extract_strided_slice %230 {offsets = [0, 0], sizes = [8, 128], strides = [1, 1]} : vector<8x384xf32> to vector<8x128xf32>
    %233 = vector.extract_strided_slice %231 {offsets = [0, 0], sizes = [8, 128], strides = [1, 1]} : vector<8x384xf32> to vector<8x128xf32>
    %234 = arith.addf %232, %233 : vector<8x128xf32>
    %cst_71 = arith.constant 5.000000e-01 : f32
    %235 = vector.broadcast %cst_71 : f32 to vector<8x128xf32>
    %236 = arith.mulf %235, %234 : vector<8x128xf32>
    %237 = math.tanh %236 : vector<8x128xf32>
    %cst_72 = arith.constant 1.000000e+00 : f32
    %238 = vector.broadcast %cst_72 : f32 to vector<8x128xf32>
    %239 = arith.addf %238, %237 : vector<8x128xf32>
    %cst_73 = arith.constant 5.000000e-01 : f32
    %240 = vector.broadcast %cst_73 : f32 to vector<8x128xf32>
    %241 = arith.mulf %240, %239 : vector<8x128xf32>
    %242 = vector.extract_strided_slice %230 {offsets = [0, 128], sizes = [8, 128], strides = [1, 1]} : vector<8x384xf32> to vector<8x128xf32>
    %243 = vector.extract_strided_slice %231 {offsets = [0, 128], sizes = [8, 128], strides = [1, 1]} : vector<8x384xf32> to vector<8x128xf32>
    %244 = arith.addf %242, %243 : vector<8x128xf32>
    %cst_74 = arith.constant 5.000000e-01 : f32
    %245 = vector.broadcast %cst_74 : f32 to vector<8x128xf32>
    %246 = arith.mulf %245, %244 : vector<8x128xf32>
    %247 = math.tanh %246 : vector<8x128xf32>
    %cst_75 = arith.constant 1.000000e+00 : f32
    %248 = vector.broadcast %cst_75 : f32 to vector<8x128xf32>
    %249 = arith.addf %248, %247 : vector<8x128xf32>
    %cst_76 = arith.constant 5.000000e-01 : f32
    %250 = vector.broadcast %cst_76 : f32 to vector<8x128xf32>
    %251 = arith.mulf %250, %249 : vector<8x128xf32>
    %252 = vector.extract_strided_slice %230 {offsets = [0, 256], sizes = [8, 128], strides = [1, 1]} : vector<8x384xf32> to vector<8x128xf32>
    %253 = vector.extract_strided_slice %231 {offsets = [0, 256], sizes = [8, 128], strides = [1, 1]} : vector<8x384xf32> to vector<8x128xf32>
    %254 = arith.addf %253, %113 : vector<8x128xf32>
    %255 = arith.mulf %241, %254 : vector<8x128xf32>
    %256 = arith.addf %252, %255 : vector<8x128xf32>
    %257 = math.tanh %256 : vector<8x128xf32>
    %cst_77 = arith.constant 1.000000e+00 : f32
    %258 = vector.broadcast %cst_77 : f32 to vector<8x128xf32>
    %259 = arith.subf %258, %251 : vector<8x128xf32>
    %260 = arith.mulf %259, %257 : vector<8x128xf32>
    %261 = arith.mulf %251, %227 : vector<8x128xf32>
    %262 = arith.addf %260, %261 : vector<8x128xf32>
    %263 = vector.extract_strided_slice %109 {offsets = [32, 0], sizes = [8, 384], strides = [1, 1]} : vector<64x384xf32> to vector<8x384xf32>
    %264 = vector.extract_strided_slice %109 {offsets = [24, 0], sizes = [8, 384], strides = [1, 1]} : vector<64x384xf32> to vector<8x384xf32>
    %265 = arith.select %118, %263, %264 : vector<8x384xi1>, vector<8x384xf32>
    %cst_78 = arith.constant dense<0.000000e+00> : vector<8x384xf32>
    %266 = tpu.matmul %262, %110, %cst_78 {dimension_numbers = #tpu.dot_dimension_numbers<[1], [0], [0], [1], [0, 0, 1, 1], [], []>} : vector<8x128xf32>, vector<128x384xf32>, vector<8x384xf32> -> vector<8x384xf32>
    %267 = vector.extract_strided_slice %265 {offsets = [0, 0], sizes = [8, 128], strides = [1, 1]} : vector<8x384xf32> to vector<8x128xf32>
    %268 = vector.extract_strided_slice %266 {offsets = [0, 0], sizes = [8, 128], strides = [1, 1]} : vector<8x384xf32> to vector<8x128xf32>
    %269 = arith.addf %267, %268 : vector<8x128xf32>
    %cst_79 = arith.constant 5.000000e-01 : f32
    %270 = vector.broadcast %cst_79 : f32 to vector<8x128xf32>
    %271 = arith.mulf %270, %269 : vector<8x128xf32>
    %272 = math.tanh %271 : vector<8x128xf32>
    %cst_80 = arith.constant 1.000000e+00 : f32
    %273 = vector.broadcast %cst_80 : f32 to vector<8x128xf32>
    %274 = arith.addf %273, %272 : vector<8x128xf32>
    %cst_81 = arith.constant 5.000000e-01 : f32
    %275 = vector.broadcast %cst_81 : f32 to vector<8x128xf32>
    %276 = arith.mulf %275, %274 : vector<8x128xf32>
    %277 = vector.extract_strided_slice %265 {offsets = [0, 128], sizes = [8, 128], strides = [1, 1]} : vector<8x384xf32> to vector<8x128xf32>
    %278 = vector.extract_strided_slice %266 {offsets = [0, 128], sizes = [8, 128], strides = [1, 1]} : vector<8x384xf32> to vector<8x128xf32>
    %279 = arith.addf %277, %278 : vector<8x128xf32>
    %cst_82 = arith.constant 5.000000e-01 : f32
    %280 = vector.broadcast %cst_82 : f32 to vector<8x128xf32>
    %281 = arith.mulf %280, %279 : vector<8x128xf32>
    %282 = math.tanh %281 : vector<8x128xf32>
    %cst_83 = arith.constant 1.000000e+00 : f32
    %283 = vector.broadcast %cst_83 : f32 to vector<8x128xf32>
    %284 = arith.addf %283, %282 : vector<8x128xf32>
    %cst_84 = arith.constant 5.000000e-01 : f32
    %285 = vector.broadcast %cst_84 : f32 to vector<8x128xf32>
    %286 = arith.mulf %285, %284 : vector<8x128xf32>
    %287 = vector.extract_strided_slice %265 {offsets = [0, 256], sizes = [8, 128], strides = [1, 1]} : vector<8x384xf32> to vector<8x128xf32>
    %288 = vector.extract_strided_slice %266 {offsets = [0, 256], sizes = [8, 128], strides = [1, 1]} : vector<8x384xf32> to vector<8x128xf32>
    %289 = arith.addf %288, %113 : vector<8x128xf32>
    %290 = arith.mulf %276, %289 : vector<8x128xf32>
    %291 = arith.addf %287, %290 : vector<8x128xf32>
    %292 = math.tanh %291 : vector<8x128xf32>
    %cst_85 = arith.constant 1.000000e+00 : f32
    %293 = vector.broadcast %cst_85 : f32 to vector<8x128xf32>
    %294 = arith.subf %293, %286 : vector<8x128xf32>
    %295 = arith.mulf %294, %292 : vector<8x128xf32>
    %296 = arith.mulf %286, %262 : vector<8x128xf32>
    %297 = arith.addf %295, %296 : vector<8x128xf32>
    %298 = vector.extract_strided_slice %109 {offsets = [40, 0], sizes = [8, 384], strides = [1, 1]} : vector<64x384xf32> to vector<8x384xf32>
    %299 = vector.extract_strided_slice %109 {offsets = [16, 0], sizes = [8, 384], strides = [1, 1]} : vector<64x384xf32> to vector<8x384xf32>
    %300 = arith.select %118, %298, %299 : vector<8x384xi1>, vector<8x384xf32>
    %cst_86 = arith.constant dense<0.000000e+00> : vector<8x384xf32>
    %301 = tpu.matmul %297, %110, %cst_86 {dimension_numbers = #tpu.dot_dimension_numbers<[1], [0], [0], [1], [0, 0, 1, 1], [], []>} : vector<8x128xf32>, vector<128x384xf32>, vector<8x384xf32> -> vector<8x384xf32>
    %302 = vector.extract_strided_slice %300 {offsets = [0, 0], sizes = [8, 128], strides = [1, 1]} : vector<8x384xf32> to vector<8x128xf32>
    %303 = vector.extract_strided_slice %301 {offsets = [0, 0], sizes = [8, 128], strides = [1, 1]} : vector<8x384xf32> to vector<8x128xf32>
    %304 = arith.addf %302, %303 : vector<8x128xf32>
    %cst_87 = arith.constant 5.000000e-01 : f32
    %305 = vector.broadcast %cst_87 : f32 to vector<8x128xf32>
    %306 = arith.mulf %305, %304 : vector<8x128xf32>
    %307 = math.tanh %306 : vector<8x128xf32>
    %cst_88 = arith.constant 1.000000e+00 : f32
    %308 = vector.broadcast %cst_88 : f32 to vector<8x128xf32>
    %309 = arith.addf %308, %307 : vector<8x128xf32>
    %cst_89 = arith.constant 5.000000e-01 : f32
    %310 = vector.broadcast %cst_89 : f32 to vector<8x128xf32>
    %311 = arith.mulf %310, %309 : vector<8x128xf32>
    %312 = vector.extract_strided_slice %300 {offsets = [0, 128], sizes = [8, 128], strides = [1, 1]} : vector<8x384xf32> to vector<8x128xf32>
    %313 = vector.extract_strided_slice %301 {offsets = [0, 128], sizes = [8, 128], strides = [1, 1]} : vector<8x384xf32> to vector<8x128xf32>
    %314 = arith.addf %312, %313 : vector<8x128xf32>
    %cst_90 = arith.constant 5.000000e-01 : f32
    %315 = vector.broadcast %cst_90 : f32 to vector<8x128xf32>
    %316 = arith.mulf %315, %314 : vector<8x128xf32>
    %317 = math.tanh %316 : vector<8x128xf32>
    %cst_91 = arith.constant 1.000000e+00 : f32
    %318 = vector.broadcast %cst_91 : f32 to vector<8x128xf32>
    %319 = arith.addf %318, %317 : vector<8x128xf32>
    %cst_92 = arith.constant 5.000000e-01 : f32
    %320 = vector.broadcast %cst_92 : f32 to vector<8x128xf32>
    %321 = arith.mulf %320, %319 : vector<8x128xf32>
    %322 = vector.extract_strided_slice %300 {offsets = [0, 256], sizes = [8, 128], strides = [1, 1]} : vector<8x384xf32> to vector<8x128xf32>
    %323 = vector.extract_strided_slice %301 {offsets = [0, 256], sizes = [8, 128], strides = [1, 1]} : vector<8x384xf32> to vector<8x128xf32>
    %324 = arith.addf %323, %113 : vector<8x128xf32>
    %325 = arith.mulf %311, %324 : vector<8x128xf32>
    %326 = arith.addf %322, %325 : vector<8x128xf32>
    %327 = math.tanh %326 : vector<8x128xf32>
    %cst_93 = arith.constant 1.000000e+00 : f32
    %328 = vector.broadcast %cst_93 : f32 to vector<8x128xf32>
    %329 = arith.subf %328, %321 : vector<8x128xf32>
    %330 = arith.mulf %329, %327 : vector<8x128xf32>
    %331 = arith.mulf %321, %297 : vector<8x128xf32>
    %332 = arith.addf %330, %331 : vector<8x128xf32>
    %333 = vector.extract_strided_slice %109 {offsets = [48, 0], sizes = [8, 384], strides = [1, 1]} : vector<64x384xf32> to vector<8x384xf32>
    %334 = vector.extract_strided_slice %109 {offsets = [8, 0], sizes = [8, 384], strides = [1, 1]} : vector<64x384xf32> to vector<8x384xf32>
    %335 = arith.select %118, %333, %334 : vector<8x384xi1>, vector<8x384xf32>
    %cst_94 = arith.constant dense<0.000000e+00> : vector<8x384xf32>
    %336 = tpu.matmul %332, %110, %cst_94 {dimension_numbers = #tpu.dot_dimension_numbers<[1], [0], [0], [1], [0, 0, 1, 1], [], []>} : vector<8x128xf32>, vector<128x384xf32>, vector<8x384xf32> -> vector<8x384xf32>
    %337 = vector.extract_strided_slice %335 {offsets = [0, 0], sizes = [8, 128], strides = [1, 1]} : vector<8x384xf32> to vector<8x128xf32>
    %338 = vector.extract_strided_slice %336 {offsets = [0, 0], sizes = [8, 128], strides = [1, 1]} : vector<8x384xf32> to vector<8x128xf32>
    %339 = arith.addf %337, %338 : vector<8x128xf32>
    %cst_95 = arith.constant 5.000000e-01 : f32
    %340 = vector.broadcast %cst_95 : f32 to vector<8x128xf32>
    %341 = arith.mulf %340, %339 : vector<8x128xf32>
    %342 = math.tanh %341 : vector<8x128xf32>
    %cst_96 = arith.constant 1.000000e+00 : f32
    %343 = vector.broadcast %cst_96 : f32 to vector<8x128xf32>
    %344 = arith.addf %343, %342 : vector<8x128xf32>
    %cst_97 = arith.constant 5.000000e-01 : f32
    %345 = vector.broadcast %cst_97 : f32 to vector<8x128xf32>
    %346 = arith.mulf %345, %344 : vector<8x128xf32>
    %347 = vector.extract_strided_slice %335 {offsets = [0, 128], sizes = [8, 128], strides = [1, 1]} : vector<8x384xf32> to vector<8x128xf32>
    %348 = vector.extract_strided_slice %336 {offsets = [0, 128], sizes = [8, 128], strides = [1, 1]} : vector<8x384xf32> to vector<8x128xf32>
    %349 = arith.addf %347, %348 : vector<8x128xf32>
    %cst_98 = arith.constant 5.000000e-01 : f32
    %350 = vector.broadcast %cst_98 : f32 to vector<8x128xf32>
    %351 = arith.mulf %350, %349 : vector<8x128xf32>
    %352 = math.tanh %351 : vector<8x128xf32>
    %cst_99 = arith.constant 1.000000e+00 : f32
    %353 = vector.broadcast %cst_99 : f32 to vector<8x128xf32>
    %354 = arith.addf %353, %352 : vector<8x128xf32>
    %cst_100 = arith.constant 5.000000e-01 : f32
    %355 = vector.broadcast %cst_100 : f32 to vector<8x128xf32>
    %356 = arith.mulf %355, %354 : vector<8x128xf32>
    %357 = vector.extract_strided_slice %335 {offsets = [0, 256], sizes = [8, 128], strides = [1, 1]} : vector<8x384xf32> to vector<8x128xf32>
    %358 = vector.extract_strided_slice %336 {offsets = [0, 256], sizes = [8, 128], strides = [1, 1]} : vector<8x384xf32> to vector<8x128xf32>
    %359 = arith.addf %358, %113 : vector<8x128xf32>
    %360 = arith.mulf %346, %359 : vector<8x128xf32>
    %361 = arith.addf %357, %360 : vector<8x128xf32>
    %362 = math.tanh %361 : vector<8x128xf32>
    %cst_101 = arith.constant 1.000000e+00 : f32
    %363 = vector.broadcast %cst_101 : f32 to vector<8x128xf32>
    %364 = arith.subf %363, %356 : vector<8x128xf32>
    %365 = arith.mulf %364, %362 : vector<8x128xf32>
    %366 = arith.mulf %356, %332 : vector<8x128xf32>
    %367 = arith.addf %365, %366 : vector<8x128xf32>
    %368 = vector.extract_strided_slice %109 {offsets = [56, 0], sizes = [8, 384], strides = [1, 1]} : vector<64x384xf32> to vector<8x384xf32>
    %369 = vector.extract_strided_slice %109 {offsets = [0, 0], sizes = [8, 384], strides = [1, 1]} : vector<64x384xf32> to vector<8x384xf32>
    %370 = arith.select %118, %368, %369 : vector<8x384xi1>, vector<8x384xf32>
    %cst_102 = arith.constant dense<0.000000e+00> : vector<8x384xf32>
    %371 = tpu.matmul %367, %110, %cst_102 {dimension_numbers = #tpu.dot_dimension_numbers<[1], [0], [0], [1], [0, 0, 1, 1], [], []>} : vector<8x128xf32>, vector<128x384xf32>, vector<8x384xf32> -> vector<8x384xf32>
    %372 = vector.extract_strided_slice %370 {offsets = [0, 0], sizes = [8, 128], strides = [1, 1]} : vector<8x384xf32> to vector<8x128xf32>
    %373 = vector.extract_strided_slice %371 {offsets = [0, 0], sizes = [8, 128], strides = [1, 1]} : vector<8x384xf32> to vector<8x128xf32>
    %374 = arith.addf %372, %373 : vector<8x128xf32>
    %cst_103 = arith.constant 5.000000e-01 : f32
    %375 = vector.broadcast %cst_103 : f32 to vector<8x128xf32>
    %376 = arith.mulf %375, %374 : vector<8x128xf32>
    %377 = math.tanh %376 : vector<8x128xf32>
    %cst_104 = arith.constant 1.000000e+00 : f32
    %378 = vector.broadcast %cst_104 : f32 to vector<8x128xf32>
    %379 = arith.addf %378, %377 : vector<8x128xf32>
    %cst_105 = arith.constant 5.000000e-01 : f32
    %380 = vector.broadcast %cst_105 : f32 to vector<8x128xf32>
    %381 = arith.mulf %380, %379 : vector<8x128xf32>
    %382 = vector.extract_strided_slice %370 {offsets = [0, 128], sizes = [8, 128], strides = [1, 1]} : vector<8x384xf32> to vector<8x128xf32>
    %383 = vector.extract_strided_slice %371 {offsets = [0, 128], sizes = [8, 128], strides = [1, 1]} : vector<8x384xf32> to vector<8x128xf32>
    %384 = arith.addf %382, %383 : vector<8x128xf32>
    %cst_106 = arith.constant 5.000000e-01 : f32
    %385 = vector.broadcast %cst_106 : f32 to vector<8x128xf32>
    %386 = arith.mulf %385, %384 : vector<8x128xf32>
    %387 = math.tanh %386 : vector<8x128xf32>
    %cst_107 = arith.constant 1.000000e+00 : f32
    %388 = vector.broadcast %cst_107 : f32 to vector<8x128xf32>
    %389 = arith.addf %388, %387 : vector<8x128xf32>
    %cst_108 = arith.constant 5.000000e-01 : f32
    %390 = vector.broadcast %cst_108 : f32 to vector<8x128xf32>
    %391 = arith.mulf %390, %389 : vector<8x128xf32>
    %392 = vector.extract_strided_slice %370 {offsets = [0, 256], sizes = [8, 128], strides = [1, 1]} : vector<8x384xf32> to vector<8x128xf32>
    %393 = vector.extract_strided_slice %371 {offsets = [0, 256], sizes = [8, 128], strides = [1, 1]} : vector<8x384xf32> to vector<8x128xf32>
    %394 = arith.addf %393, %113 : vector<8x128xf32>
    %395 = arith.mulf %381, %394 : vector<8x128xf32>
    %396 = arith.addf %392, %395 : vector<8x128xf32>
    %397 = math.tanh %396 : vector<8x128xf32>
    %cst_109 = arith.constant 1.000000e+00 : f32
    %398 = vector.broadcast %cst_109 : f32 to vector<8x128xf32>
    %399 = arith.subf %398, %391 : vector<8x128xf32>
    %400 = arith.mulf %399, %397 : vector<8x128xf32>
    %401 = arith.mulf %391, %367 : vector<8x128xf32>
    %402 = arith.addf %400, %401 : vector<8x128xf32>
    %403 = vector.extract_strided_slice %402 {offsets = [0, 0], sizes = [2, 32], strides = [1, 1]} : vector<8x128xf32> to vector<2x32xf32>
    %c0_110 = arith.constant 0 : index
    %c0_111 = arith.constant 0 : index
    %c0_112 = arith.constant 0 : index
    %404 = vector.load %arg8[%c0_110, %c0_111, %c0_112] : memref<2x2x32xf32, #tpu.memory_space<vmem>>, vector<1x2x32xf32>
    %405 = vector.shape_cast %404 : vector<1x2x32xf32> to vector<2x32xf32>
    %406 = vector.shape_cast %403 : vector<2x32xf32> to vector<1x2x32xf32>
    tpu.vector_store %arg8[%c0_110, %c0_111, %c0_112], %406 {strides = array<i32>} : memref<2x2x32xf32, #tpu.memory_space<vmem>>, vector<1x2x32xf32>,
    %407 = vector.extract_strided_slice %402 {offsets = [0, 32], sizes = [2, 32], strides = [1, 1]} : vector<8x128xf32> to vector<2x32xf32>
    %c1_113 = arith.constant 1 : index
    %c0_114 = arith.constant 0 : index
    %c0_115 = arith.constant 0 : index
    %408 = vector.load %arg8[%c1_113, %c0_114, %c0_115] : memref<2x2x32xf32, #tpu.memory_space<vmem>>, vector<1x2x32xf32>
    %409 = vector.shape_cast %408 : vector<1x2x32xf32> to vector<2x32xf32>
    %410 = vector.shape_cast %407 : vector<2x32xf32> to vector<1x2x32xf32>
    tpu.vector_store %arg8[%c1_113, %c0_114, %c0_115], %410 {strides = array<i32>} : memref<2x2x32xf32, #tpu.memory_space<vmem>>, vector<1x2x32xf32>,
    %411 = arith.select %121, %157, %402 : vector<8x128xi1>, vector<8x128xf32>
    %412 = arith.select %121, %192, %367 : vector<8x128xi1>, vector<8x128xf32>
    %413 = arith.select %121, %227, %332 : vector<8x128xi1>, vector<8x128xf32>
    %414 = arith.select %121, %262, %297 : vector<8x128xi1>, vector<8x128xf32>
    %415 = arith.select %121, %297, %262 : vector<8x128xi1>, vector<8x128xf32>
    %416 = arith.select %121, %332, %227 : vector<8x128xi1>, vector<8x128xf32>
    %417 = arith.select %121, %367, %192 : vector<8x128xi1>, vector<8x128xf32>
    %418 = arith.select %121, %402, %157 : vector<8x128xi1>, vector<8x128xf32>
    %419 = tpu.concatenate %411, %412, %413, %414, %415, %416, %417, %418 in 0 : vector<8x128xf32>, vector<8x128xf32>, vector<8x128xf32>, vector<8x128xf32>, vector<8x128xf32>, vector<8x128xf32>, vector<8x128xf32>, vector<8x128xf32> -> vector<64x128xf32>
    %cst_116 = arith.constant 0.000000e+00 : f32
    %420 = vector.broadcast %cst_116 : f32 to vector<64x128xf32>
    %421 = arith.maximumf %419, %420 : vector<64x128xf32>
    %c0_117 = arith.constant 0 : index
    %c0_118 = arith.constant 0 : index
    %422 = vector.load %arg5[%c0_117, %c0_118] : memref<128x128xf32, #tpu.memory_space<vmem>>, vector<128x128xf32>
    %cst_119 = arith.constant dense<0.000000e+00> : vector<64x128xf32>
    %423 = tpu.matmul %421, %422, %cst_119 {dimension_numbers = #tpu.dot_dimension_numbers<[1], [0], [0], [1], [0, 0, 1, 1], [], []>} : vector<64x128xf32>, vector<128x128xf32>, vector<64x128xf32> -> vector<64x128xf32>
    %c0_120 = arith.constant 0 : index
    %c0_121 = arith.constant 0 : index
    %424 = vector.load %arg6[%c0_120, %c0_121] : memref<1x128xf32, #tpu.memory_space<vmem>>, vector<1x128xf32>
    %425 = vector.broadcast %424 : vector<1x128xf32> to vector<64x128xf32>
    %426 = arith.addf %423, %425 : vector<64x128xf32>
    %427 = vector.extract_strided_slice %426 {offsets = [0, 0], sizes = [2, 40], strides = [1, 1]} : vector<64x128xf32> to vector<2x40xf32>
    %c0_122 = arith.constant 0 : index
    %c0_123 = arith.constant 0 : index
    %c0_124 = arith.constant 0 : index
    %428 = vector.load %arg7[%c0_122, %c0_123, %c0_124] : memref<2x8x40xf32, #tpu.memory_space<vmem>>, vector<2x1x40xf32>
    %429 = vector.shape_cast %428 : vector<2x1x40xf32> to vector<2x40xf32>
    %430 = vector.shape_cast %427 : vector<2x40xf32> to vector<2x1x40xf32>
    tpu.vector_store %arg7[%c0_122, %c0_123, %c0_124], %430 {strides = array<i32>} : memref<2x8x40xf32, #tpu.memory_space<vmem>>, vector<2x1x40xf32>,
    %431 = vector.extract_strided_slice %426 {offsets = [8, 0], sizes = [2, 40], strides = [1, 1]} : vector<64x128xf32> to vector<2x40xf32>
    %c0_125 = arith.constant 0 : index
    %c1_126 = arith.constant 1 : index
    %c0_127 = arith.constant 0 : index
    %432 = vector.load %arg7[%c0_125, %c1_126, %c0_127] : memref<2x8x40xf32, #tpu.memory_space<vmem>>, vector<2x1x40xf32>
    %433 = vector.shape_cast %432 : vector<2x1x40xf32> to vector<2x40xf32>
    %434 = vector.shape_cast %431 : vector<2x40xf32> to vector<2x1x40xf32>
    tpu.vector_store %arg7[%c0_125, %c1_126, %c0_127], %434 {strides = array<i32>} : memref<2x8x40xf32, #tpu.memory_space<vmem>>, vector<2x1x40xf32>,
    %435 = vector.extract_strided_slice %426 {offsets = [16, 0], sizes = [2, 40], strides = [1, 1]} : vector<64x128xf32> to vector<2x40xf32>
    %c0_128 = arith.constant 0 : index
    %c2_129 = arith.constant 2 : index
    %c0_130 = arith.constant 0 : index
    %436 = vector.load %arg7[%c0_128, %c2_129, %c0_130] : memref<2x8x40xf32, #tpu.memory_space<vmem>>, vector<2x1x40xf32>
    %437 = vector.shape_cast %436 : vector<2x1x40xf32> to vector<2x40xf32>
    %438 = vector.shape_cast %435 : vector<2x40xf32> to vector<2x1x40xf32>
    tpu.vector_store %arg7[%c0_128, %c2_129, %c0_130], %438 {strides = array<i32>} : memref<2x8x40xf32, #tpu.memory_space<vmem>>, vector<2x1x40xf32>,
    %439 = vector.extract_strided_slice %426 {offsets = [24, 0], sizes = [2, 40], strides = [1, 1]} : vector<64x128xf32> to vector<2x40xf32>
    %c0_131 = arith.constant 0 : index
    %c3_132 = arith.constant 3 : index
    %c0_133 = arith.constant 0 : index
    %440 = vector.load %arg7[%c0_131, %c3_132, %c0_133] : memref<2x8x40xf32, #tpu.memory_space<vmem>>, vector<2x1x40xf32>
    %441 = vector.shape_cast %440 : vector<2x1x40xf32> to vector<2x40xf32>
    %442 = vector.shape_cast %439 : vector<2x40xf32> to vector<2x1x40xf32>
    tpu.vector_store %arg7[%c0_131, %c3_132, %c0_133], %442 {strides = array<i32>} : memref<2x8x40xf32, #tpu.memory_space<vmem>>, vector<2x1x40xf32>,
    %443 = vector.extract_strided_slice %426 {offsets = [32, 0], sizes = [2, 40], strides = [1, 1]} : vector<64x128xf32> to vector<2x40xf32>
    %c0_134 = arith.constant 0 : index
    %c4_135 = arith.constant 4 : index
    %c0_136 = arith.constant 0 : index
    %444 = vector.load %arg7[%c0_134, %c4_135, %c0_136] : memref<2x8x40xf32, #tpu.memory_space<vmem>>, vector<2x1x40xf32>
    %445 = vector.shape_cast %444 : vector<2x1x40xf32> to vector<2x40xf32>
    %446 = vector.shape_cast %443 : vector<2x40xf32> to vector<2x1x40xf32>
    tpu.vector_store %arg7[%c0_134, %c4_135, %c0_136], %446 {strides = array<i32>} : memref<2x8x40xf32, #tpu.memory_space<vmem>>, vector<2x1x40xf32>,
    %447 = vector.extract_strided_slice %426 {offsets = [40, 0], sizes = [2, 40], strides = [1, 1]} : vector<64x128xf32> to vector<2x40xf32>
    %c0_137 = arith.constant 0 : index
    %c5_138 = arith.constant 5 : index
    %c0_139 = arith.constant 0 : index
    %448 = vector.load %arg7[%c0_137, %c5_138, %c0_139] : memref<2x8x40xf32, #tpu.memory_space<vmem>>, vector<2x1x40xf32>
    %449 = vector.shape_cast %448 : vector<2x1x40xf32> to vector<2x40xf32>
    %450 = vector.shape_cast %447 : vector<2x40xf32> to vector<2x1x40xf32>
    tpu.vector_store %arg7[%c0_137, %c5_138, %c0_139], %450 {strides = array<i32>} : memref<2x8x40xf32, #tpu.memory_space<vmem>>, vector<2x1x40xf32>,
    %451 = vector.extract_strided_slice %426 {offsets = [48, 0], sizes = [2, 40], strides = [1, 1]} : vector<64x128xf32> to vector<2x40xf32>
    %c0_140 = arith.constant 0 : index
    %c6_141 = arith.constant 6 : index
    %c0_142 = arith.constant 0 : index
    %452 = vector.load %arg7[%c0_140, %c6_141, %c0_142] : memref<2x8x40xf32, #tpu.memory_space<vmem>>, vector<2x1x40xf32>
    %453 = vector.shape_cast %452 : vector<2x1x40xf32> to vector<2x40xf32>
    %454 = vector.shape_cast %451 : vector<2x40xf32> to vector<2x1x40xf32>
    tpu.vector_store %arg7[%c0_140, %c6_141, %c0_142], %454 {strides = array<i32>} : memref<2x8x40xf32, #tpu.memory_space<vmem>>, vector<2x1x40xf32>,
    %455 = vector.extract_strided_slice %426 {offsets = [56, 0], sizes = [2, 40], strides = [1, 1]} : vector<64x128xf32> to vector<2x40xf32>
    %c0_143 = arith.constant 0 : index
    %c7_144 = arith.constant 7 : index
    %c0_145 = arith.constant 0 : index
    %456 = vector.load %arg7[%c0_143, %c7_144, %c0_145] : memref<2x8x40xf32, #tpu.memory_space<vmem>>, vector<2x1x40xf32>
    %457 = vector.shape_cast %456 : vector<2x1x40xf32> to vector<2x40xf32>
    %458 = vector.shape_cast %455 : vector<2x40xf32> to vector<2x1x40xf32>
    tpu.vector_store %arg7[%c0_143, %c7_144, %c0_145], %458 {strides = array<i32>} : memref<2x8x40xf32, #tpu.memory_space<vmem>>, vector<2x1x40xf32>,
    return
  }
  func.func @transform_0(%arg0: i32, %arg1: memref<2x8xi32, #tpu.memory_space<smem>>) -> (i32, i32) {
    %c0_i32 = arith.constant 0 : i32
    %c0_i32_0 = arith.constant 0 : i32
    %c0_i32_1 = arith.constant 0 : i32
    return %c0_i32, %c0_i32_0 : i32, i32
  }
  func.func @transform_1(%arg0: i32, %arg1: memref<2x8xi32, #tpu.memory_space<smem>>) -> (i32, i32) {
    %c0_i32 = arith.constant 0 : i32
    %c0_i32_0 = arith.constant 0 : i32
    %c0_i32_1 = arith.constant 0 : i32
    return %c0_i32, %c0_i32_0 : i32, i32
  }
  func.func @transform_2(%arg0: i32, %arg1: memref<2x8xi32, #tpu.memory_space<smem>>) -> (i32, i32) {
    %c0_i32 = arith.constant 0 : i32
    %c0_i32_0 = arith.constant 0 : i32
    %c0_i32_1 = arith.constant 0 : i32
    return %c0_i32, %c0_i32_0 : i32, i32
  }
  func.func @transform_3(%arg0: i32, %arg1: memref<2x8xi32, #tpu.memory_space<smem>>) -> (i32, i32) {
    %c0_i32 = arith.constant 0 : i32
    %c0_i32_0 = arith.constant 0 : i32
    %c0_i32_1 = arith.constant 0 : i32
    return %c0_i32, %c0_i32_0 : i32, i32
  }
  func.func @transform_4(%arg0: i32, %arg1: memref<2x8xi32, #tpu.memory_space<smem>>) -> (i32, i32) {
    %c0_i32 = arith.constant 0 : i32
    %c0_i32_0 = arith.constant 0 : i32
    %c0_i32_1 = arith.constant 0 : i32
    return %c0_i32, %c0_i32_0 : i32, i32
  }
  func.func @transform_5(%arg0: i32, %arg1: memref<2x8xi32, #tpu.memory_space<smem>>) -> (i32, i32, i32) {
    %c0_i32 = arith.constant 0 : i32
    %c0_i32_0 = arith.constant 0 : i32
    %c0_i32_1 = arith.constant 0 : i32
    %c0_i32_2 = arith.constant 0 : i32
    return %c0_i32, %c0_i32_0, %c0_i32_1 : i32, i32, i32
  }
  func.func @transform_6(%arg0: i32, %arg1: memref<2x8xi32, #tpu.memory_space<smem>>) -> (i32, i32, i32) {
    %c0_i32 = arith.constant 0 : i32
    %c0_i32_0 = arith.constant 0 : i32
    %c0_i32_1 = arith.constant 0 : i32
    %c0_i32_2 = arith.constant 0 : i32
    return %c0_i32, %c0_i32_0, %c0_i32_1 : i32, i32, i32
  }
}

</mosaic_0001>

<bundles_post_ra>
// kernel: mlb_rnn_forward.1
= control target key start
LH: loop header
LB: loop body
LE: loop exit
PB: predicated region body
PF: predicated region fallthrough
CT: control target
= control target key end

     0   :  { %s4548_s0 = inlined_call_operand.vmem [shape: s32[2,8], index: 0, kind: input, shape index: {}]   ;;  %s4549_s1 = inlined_call_operand.hbm [shape: f32[128,384], index: 1, kind: input, shape index: {}]   ;;  %s4550_s2 = inlined_call_operand.hbm [shape: f32[128,384], index: 2, kind: input, shape index: {}]   ;;  %s4551_s3 = inlined_call_operand.vmem [shape: f32[1,128], index: 3, kind: input, shape index: {}]   ;;  %s4552_s4 = inlined_call_operand.hbm [shape: f32[128,128], index: 4, kind: input, shape index: {}]   ;;  %s4553_s5 = inlined_call_operand.hbm [shape: f32[1,128], index: 5, kind: input, shape index: {}]   ;;  %s4554_s6 = inlined_call_operand.hbm [shape: f32[2,8,40], index: 6, kind: output, shape index: {0}]   ;;  %s4555_s7 = inlined_call_operand.hbm [shape: f32[2,2,32], index: 7, kind: output, shape index: {1}]  }
   0x1   :  { %s13_s26 = sshll.u32 %s4548_s0, 4  ;;  %s14_s26 = int_to_ptr.vmem [resolvable:$true] %s13_s26 }
   0x2   :  { %s3396_s27 = scalar_lea.vmem %s14_s26, 32  ;;  %p3401_p1 = scmp.lt.s32.totalorder %s14_s26, %s14_s26 }
   0x3   :  { %p3397_p0 = scmp.ne.s32.totalorder %s14_s26, %s3396_s27  ;;  %p3402_p2 = scmp.lt.s32.totalorder %s3396_s27, %s3396_s27 }
   0x5   :  { %p3403_p3 = por %p3402_p2, %p3401_p1 }
   0x7   :  { %p3404_p4 = pnand %p3403_p3, %p3397_p0 }
   0x9   :  { %3407 = shalt.err (!%p3404_p4)  }
   0xa   :  { %s3552_s28 = smov [#allocation3]  }
   0xb   :  { %16 = dma.vmem_to_smem %s14_s26, 32, %s3552_s28, [#allocation2] }
   0xc   :  { %3540 = dma.done.wait [#allocation2], 32 }
   0xd   :  { %3541 = vsyncadd [#allocation2], 4294967264 }
   0xe   :  { %18 = sfence }
   0xf   :  { %19 = vsyncpa [#allocation5], 0 }
  0x10   :  { %20 = vsyncpa [#allocation8], 0 }
  0x11   :  { %21 = vsyncpa [#allocation11], 0 }
  0x12   :  { %22 = vsyncpa [#allocation6], 0 }
  0x13   :  { %23 = vsyncpa [#allocation14], 0  ;;  %s3553_s29 = smov [#allocation7]   ;;  %s3554_s30 = smov [#allocation4]  }
  0x14   :  { %s41_s0 = sshll.u32 %s3553_s29, 4  ;;  %s29_s8 = sshll.u32 %s3554_s30, 4  ;;  %s42_s0 = int_to_ptr.vmem [resolvable:$true] %s41_s0  ;;  %s3614_s8 = int_to_ptr.vmem [resolvable:$true] %s29_s8 }
  0x15   :  { %s3408_s11 = scalar_lea.hbm %s4550_s2, 6144 }
  0x16   :  { %p3409_p5 = scmp.ne.s32.totalorder %s4550_s2, %s3408_s11  ;;  %p3412_p6 = scmp.lt.u32.totalorder %s3408_s11, %s4550_s2 }
  0x18   :  { %p3414_p7 = pnand %p3412_p6, %p3409_p5 }
  0x1a   :  { %3417 = shalt.err (!%p3414_p7)
}
  0x1b   :  { %s3418_s16 = scalar_lea.vmem %s42_s0, 6144  ;;  %p3423_p9 = scmp.lt.s32.totalorder %s42_s0, %s42_s0 }
  0x1c   :  { %p3419_p8 = scmp.ne.s32.totalorder %s42_s0, %s3418_s16  ;;  %p3424_p10 = scmp.lt.s32.totalorder %s3418_s16, %s3418_s16 }
  0x1e   :  { %p3425_p11 = por %p3424_p10, %p3423_p9 }
  0x20   :  { %p3426_p12 = pnand %p3425_p11, %p3419_p8 }
  0x22   :  { %3429 = shalt.err (!%p3426_p12)
}
  0x23   :  { %s3555_s17 = smov 384   ;;  %s3556_s18 = smov 24  }
  0x24   :  { %47 = dma.hbm_to_vmem [thread:$0]  %s4550_s2, 6144, %s42_s0, [#allocation8], %s3555_s17, %s3555_s17, %s3556_s18  }
  0x25   :  { %s3430_s23 = scalar_lea.hbm %s4549_s1, 6144 }
  0x26   :  { %p3431_p13 = scmp.ne.s32.totalorder %s4549_s1, %s3430_s23  ;;  %p3434_p0 = scmp.lt.u32.totalorder %s3430_s23, %s4549_s1 }
  0x28   :  { %p3436_p1 = pnand %p3434_p0, %p3431_p13 }
  0x2a   :  { %3439 = shalt.err (!%p3436_p1)
}
  0x2b   :  { %s3440_s28 = scalar_lea.vmem %s3614_s8, 6144  ;;  %p3445_p3 = scmp.lt.s32.totalorder %s3614_s8, %s3614_s8 }
  0x2c   :  { %p3441_p2 = scmp.ne.s32.totalorder %s3614_s8, %s3440_s28  ;;  %p3446_p4 = scmp.lt.s32.totalorder %s3440_s28, %s3440_s28 }
  0x2e   :  { %p3447_p5 = por %p3446_p4, %p3445_p3 }
  0x30   :  { %p3448_p6 = pnand %p3447_p5, %p3441_p2 }
  0x32   :  { %3451 = shalt.err (!%p3448_p6)
}
  0x33   :  { %35 = dma.hbm_to_vmem [thread:$0]  %s4549_s1, 6144, %s3614_s8, [#allocation5], %s3555_s17, %s3555_s17, %s3556_s18  }
  0x34   :  { %s3557_s0 = smov [#allocation9]   ;;  %s3452_s11 = scalar_lea.hbm %s4552_s4, 2048 }
  0x35   :  { %s55_s30 = sshll.u32 %s3557_s0, 4  ;;  %p3453_p7 = scmp.ne.s32.totalorder %s4552_s4, %s3452_s11  ;;  %s56_s30 = int_to_ptr.vmem [resolvable:$true] %s55_s30 }
  0x36   :  { %p3456_p8 = scmp.lt.u32.totalorder %s3452_s11, %s4552_s4 }
  0x38   :  { %p3458_p9 = pnand %p3456_p8, %p3453_p7 }
  0x3a   :  { %3461 = shalt.err (!%p3458_p9)
}
  0x3b   :  { %s3462_s16 = scalar_lea.vmem %s56_s30, 2048  ;;  %p3467_p11 = scmp.lt.s32.totalorder %s56_s30, %s56_s30 }
  0x3c   :  { %p3463_p10 = scmp.ne.s32.totalorder %s56_s30, %s3462_s16  ;;  %p3468_p12 = scmp.lt.s32.totalorder %s3462_s16, %s3462_s16 }
  0x3e   :  { %p3469_p13 = por %p3468_p12, %p3467_p11 }
  0x40   :  { %p3470_p0 = pnand %p3469_p13, %p3463_p10 }
  0x42   :  { %3473 = shalt.err (!%p3470_p0)
}
  0x43   :  { %s3558_s1 = smov 128   ;;  %s3559_s8 = smov 8  }
  0x44   :  { %61 = dma.hbm_to_vmem [thread:$0]  %s4552_s4, 2048, %s56_s30, [#allocation8], %s3558_s1, %s3558_s1, %s3559_s8  }
  0x45   :  { %s3560_s19 = smov [#allocation10]   ;;  %s3474_s23 = scalar_lea.hbm %s4553_s5, 16 }
  0x46   :  { %s68_s20 = sshll.u32 %s3560_s19, 4  ;;  %p3475_p1 = scmp.ne.s32.totalorder %s4553_s5, %s3474_s23  ;;  %s69_s20 = int_to_ptr.vmem [resolvable:$true] %s68_s20 }
  0x47   :  { %p3478_p2 = scmp.lt.u32.totalorder %s3474_s23, %s4553_s5 }
  0x49   :  { %p3480_p3 = pnand %p3478_p2, %p3475_p1 }
  0x4b   :  { %3483 = shalt.err (!%p3480_p3)
}
  0x4c   :  { %s3484_s28 = scalar_lea.vmem %s69_s20, 16  ;;  %s3488_s4 = scalar_lea.vmem %s69_s20, 32 }
  0x4d   :  { %p3485_p4 = scmp.ne.s32.totalorder %s69_s20, %s3484_s28  ;;  %p3489_p5 = scmp.lt.s32.totalorder %s69_s20, %s69_s20 }
  0x4e   :  { %p3490_p6 = scmp.lt.s32.totalorder %s3488_s4, %s3484_s28 }
  0x50   :  { %p3491_p7 = por %p3490_p6, %p3489_p5 }
  0x52   :  { %p3492_p8 = pnand %p3491_p7, %p3485_p4 }
  0x54   :  { %3495 = shalt.err (!%p3492_p8)
}
  0x55   :  { %71 = dma.hbm_to_vmem [thread:$0]  %s4553_s5, 16, %s69_s20, [#allocation11]  }
  0x56   :  { %3542 = dma.done.wait [#allocation5], 6144  }
  0x57   :  { %3543 = vsyncadd [#allocation5], 4294961152 }
  0x58   :  { %3544 = dma.done.wait [#allocation8], 8192  }
  0x59   :  { %3545 = vsyncadd [#allocation8], 4294959104 }
  0x5a   :  { %3546 = dma.done.wait [#allocation11], 16  }
  0x5b   :  { %3547 = vsyncadd [#allocation11], 4294967280  ;;  %v4556_v0 = vmov 0.0   ;;  %v163_v1 = vld [vmem:[#allocation4 + $0x8] sm:$0xff]  ;;  %v166_v2 = vld [vmem:[#allocation4 + $0x20] sm:$0xff]  ;;  %v84_v44 = vlaneseq  ;;  %s3682_s5 = sld [smem:[#allocation3]] }
  0x5c   :  { %274 = vmatprep.mubr.f32.mxu1 %v4556_v0  ;;  %559 = vmatprep.mubr.f32.mxu0 %v4556_v0  ;;  %v162_v3 = vld [vmem:[#allocation4] sm:$0xff]  ;;  %v2785_v4 = vpack.c.bf16 %v166_v2, %v163_v1  ;;  %v165_v5 = vld [vmem:[#allocation4 + $0x18] sm:$0xff]  ;;  %v172_v7 = vld [vmem:[#allocation4 + $0x50] sm:$0xff]  ;;  %s3689_s0 = sld [smem:[#allocation3 + $0x80]]  ;;  %s3695_s30 = sld [smem:[#allocation3 + $0x1]]  ;;  %vm3564_vm10 = vmmov 0  }
  0x5d   :  { %v169_v6 = vld [vmem:[#allocation4 + $0x38] sm:$0xff]  ;;  %v2787_v8 = vpack.c.bf16 %v165_v5, %v162_v3  ;;  %v168_v10 = vld [vmem:[#allocation4 + $0x30] sm:$0xff]  ;;  %v171_v11 = vld [vmem:[#allocation4 + $0x48] sm:$0xff]  ;;  %v3692_v58 = vshrl.u32 %v84_v44, 7  ;;  %s3702_s9 = sld [smem:[#allocation3 + $0x81]]  ;;  %s3707_s10 = sld [smem:[#allocation3 + $0x2]] }
  0x5e   :  { %v2789_v9 = vpack.c.bf16 %v172_v7, %v169_v6  ;;  %v175_v12 = vld [vmem:[#allocation4 + $0x68] sm:$0xff]  ;;  %2786 = vmatprep.subr.bf16.mxu1 %v2785_v4  ;;  %v178_v13 = vld [vmem:[#allocation4 + $0x80] sm:$0xff]  ;;  %v2791_v14 = vpack.c.bf16 %v171_v11, %v168_v10  ;;  %v177_v17 = vld [vmem:[#allocation4 + $0x78] sm:$0xff]  ;;  %s3718_s11 = sld [smem:[#allocation3 + $0x82]]  ;;  %s3722_s12 = sld [smem:[#allocation3 + $0x3]]  ;;  %vm1788_vm14 = vcmask 254976  }
  0x5f   :  { %2788 = vmatpush1.bf16.msra.mxu1 %v2787_v8  ;;  %v2793_v15 = vpack.c.bf16 %v178_v13, %v175_v12  ;;  %v174_v16 = vld [vmem:[#allocation4 + $0x60] sm:$0xff]  ;;  %v181_v18 = vld [vmem:[#allocation4 + $0x98] sm:$0xff]  ;;  %v184_v19 = vld [vmem:[#allocation4 + $0xb0] sm:$0xff]  ;;  %4567 = vst [vmem:[#allocation21_spill] sm:$0xff] %v3692_v58  ;;  %vm88_vm0 = vcmp.eq.s32.totalorder %v3692_v58, 0  ;;  %vm92_vm1 = vcmp.eq.s32.totalorder %v3692_v58, 1 }
  0x60   :  { %2790 = vmatprep.subr.bf16.mxu1 %v2789_v9  ;;  %v2795_v20 = vpack.c.bf16 %v177_v17, %v174_v16  ;;  %v2797_v21 = vpack.c.bf16 %v184_v19, %v181_v18  ;;  %v180_v22 = vld [vmem:[#allocation4 + $0x90] sm:$0xff]  ;;  %v183_v23 = vld [vmem:[#allocation4 + $0xa8] sm:$0xff]  ;;  %v190_v25 = vld [vmem:[#allocation4 + $0xe0] sm:$0xff]  ;;  %s3739_s13 = sld [smem:[#allocation3 + $0x83]]  ;;  %s3743_s14 = sld [smem:[#allocation3 + $0x4]] }
  0x61   :  { %v187_v24 = vld [vmem:[#allocation4 + $0xc8] sm:$0xff]  ;;  %v432_v27 = vld [vmem:[#allocation7 + $0x20] sm:$0xff]  ;;  %v431_v29 = vld [vmem:[#allocation7 + $0x18] sm:$0xff]  ;;  %v2799_v30 = vpack.c.bf16 %v183_v23, %v180_v22  ;;  %v90_v8 = vstv %s3682_s5  ;;  %s3759_s15 = sld [smem:[#allocation3 + $0x84]]  ;;  %s3767_s16 = sld [smem:[#allocation3 + $0x5]] }
  0x62   :  { %v429_v26 = vld [vmem:[#allocation7 + $0x8] sm:$0xff]  ;;  %v428_v28 = vld [vmem:[#allocation7] sm:$0xff]  ;;  %v189_v32 = vld [vmem:[#allocation4 + $0xd8] sm:$0xff]  ;;  %v2801_v36 = vpack.c.bf16 %v190_v25, %v187_v24  ;;  %v91_v19 = vsel %vm88_vm0, %v90_v8, 4294967295  ;;  %v100_v23 = vstv %s3695_s30  ;;  %s3784_s17 = sld [smem:[#allocation3 + $0x85]]  ;;  %s3792_s18 = sld [smem:[#allocation3 + $0x6]] }
  0x63   :  { %2792 = vmatpush1.bf16.msra.mxu1 %v2791_v14  ;;  %v186_v31 = vld [vmem:[#allocation4 + $0xc0] sm:$0xff]  ;;  %v3674_v33 = vpack.c.bf16 %v432_v27, %v429_v26  ;;  %v3676_v34 = vpack.c.bf16 %v431_v29, %v428_v28  ;;  %v435_v35 = vld [vmem:[#allocation7 + $0x38] sm:$0xff]  ;;  %v438_v37 = vld [vmem:[#allocation7 + $0x50] sm:$0xff]  ;;  %v3727_v26 = vand.u32 127, %v84_v44  ;;  %s3807_s19 = sld [smem:[#allocation3 + $0x86]]  ;;  %s3815_s20 = sld [smem:[#allocation3 + $0x7]] }
  0x64   :  { %2794 = vmatprep.subr.bf16.mxu1 %v2793_v15  ;;  %v434_v38 = vld [vmem:[#allocation7 + $0x30] sm:$0xff]  ;;  %v437_v39 = vld [vmem:[#allocation7 + $0x48] sm:$0xff]  ;;  %v193_v40 = vld [vmem:[#allocation4 + $0xf8] sm:$0xff]  ;;  %v3679_v42 = vpack.c.bf16 %v438_v37, %v435_v35  ;;  %v2803_v47 = vpack.c.bf16 %v189_v32, %v186_v31  ;;  %v101_v35 = vsel %vm88_vm0, %v100_v23, 4294967295  ;;  %s3828_s21 = sld [smem:[#allocation3 + $0x87]]  ;;  %s3566_s24 = smov [#allocation13]  }
  0x65   :  { %v196_v41 = vld [vmem:[#allocation4 + $0x110] sm:$0xff]  ;;  %2850 = vmatprep.subr.bf16.mxu0 %v3674_v33  ;;  %v441_v43 = vld [vmem:[#allocation7 + $0x68] sm:$0xff]  ;;  %v3684_v45 = vpack.c.bf16 %v437_v39, %v434_v38  ;;  %v444_v46 = vld [vmem:[#allocation7 + $0x80] sm:$0xff]  ;;  %4568 = vst [vmem:[#allocation22_spill] sm:$0xff] %v3727_v26  ;;  %vm488_vm11 = vcmp.lt.s32.totalorder %v3727_v26, 32  ;;  %s2174_s25 = sshll.u32 %s3566_s24, 4  ;;  %s2175_s25 = int_to_ptr.vmem [resolvable:$true] %s2174_s25 }
  0x66   :  { %2852 = vmatpush1.bf16.msra.mxu0 %v3676_v34  ;;  %v192_v48 = vld [vmem:[#allocation4 + $0xf0] sm:$0xff]  ;;  %v3687_v49 = vpack.c.bf16 %v444_v46, %v441_v43  ;;  %v440_v50 = vld [vmem:[#allocation7 + $0x60] sm:$0xff]  ;;  %v443_v51 = vld [vmem:[#allocation7 + $0x78] sm:$0xff]  ;;  %v2805_v52 = vpack.c.bf16 %v196_v41, %v193_v40  ;;  %v109_v40 = vstv %s3707_s10  ;;  %v127_v8 = vstv %s3743_s14  ;;  %s3496_s26 = scalar_lea.vmem %s2175_s25, 64  ;;  %p3501_p10 = scmp.lt.s32.totalorder %s2175_s25, %s2175_s25 }
  0x67   :  { %2796 = vmatpush1.bf16.msra.mxu1 %v2795_v20  ;;  %2854 = vmatprep.subr.bf16.mxu0 %v3679_v42  ;;  %v195_v53 = vld [vmem:[#allocation4 + $0x108] sm:$0xff]  ;;  %v447_v54 = vld [vmem:[#allocation7 + $0x98] sm:$0xff]  ;;  %v450_v55 = vld [vmem:[#allocation7 + $0xb0] sm:$0xff]  ;;  %v3697_v59 = vpack.c.bf16 %v443_v51, %v440_v50  ;;  %v94_v20 = vstv %s3689_s0  ;;  %v110_v51 = vsel %vm88_vm0, %v109_v40, 4294967295  ;;  %p3497_p9 = scmp.ne.s32.totalorder %s2175_s25, %s3496_s26  ;;  %p3502_p11 = scmp.lt.s32.totalorder %s3496_s26, %s3496_s26 }
  0x68   :  { %2798 = vmatprep.subr.bf16.mxu1 %v2797_v21  ;;  %v199_v56 = vld [vmem:[#allocation4 + $0x128] sm:$0xff]  ;;  %v202_v57 = vld [vmem:[#allocation4 + $0x140] sm:$0xff]  ;;  %v2807_v60 = vpack.c.bf16 %v195_v53, %v192_v48  ;;  %v3700_v62 = vpack.c.bf16 %v450_v55, %v447_v54  ;;  %v446_v63 = vld [vmem:[#allocation7 + $0x90] sm:$0xff] }
  0x69   :  { %v198_v61 = vld [vmem:[#allocation4 + $0x120] sm:$0xff]  ;;  %v449_v1 = vld [vmem:[#allocation7 + $0xa8] sm:$0xff]  ;;  %v2809_v2 = vpack.c.bf16 %v202_v57, %v199_v56  ;;  %v201_v3 = vld [vmem:[#allocation4 + $0x138] sm:$0xff]  ;;  %v3562_v56 = vmov 1.0   ;;  %v118_v57 = vstv %s3722_s12  ;;  %p3503_p12 = por %p3502_p11, %p3501_p10 }
  0x6a   :  { %2856 = vmatpush1.bf16.msra.mxu0 %v3684_v45  ;;  %v453_v4 = vld [vmem:[#allocation7 + $0xc8] sm:$0xff]  ;;  %v456_v5 = vld [vmem:[#allocation7 + $0xe0] sm:$0xff]  ;;  %v205_v6 = vld [vmem:[#allocation4 + $0x158] sm:$0xff]  ;;  %v3709_v9 = vpack.c.bf16 %v449_v1, %v446_v63  ;;  %v2811_v10 = vpack.c.bf16 %v201_v3, %v198_v61 }
  0x6b   :  { %2800 = vmatpush1.bf16.msra.mxu1 %v2799_v30  ;;  %2858 = vmatprep.subr.bf16.mxu0 %v3687_v49  ;;  %v208_v7 = vld [vmem:[#allocation4 + $0x170] sm:$0xff]  ;;  %v3712_v12 = vpack.c.bf16 %v456_v5, %v453_v4  ;;  %v452_v13 = vld [vmem:[#allocation7 + $0xc0] sm:$0xff]  ;;  %v455_v14 = vld [vmem:[#allocation7 + $0xd8] sm:$0xff]  ;;  %v3734_v30 = vsel %vm92_vm1, %v94_v20, %v91_v19  ;;  %v119_v4 = vsel %vm88_vm0, %v118_v57, 4294967295  ;;  %v121_v5 = vstv %s3739_s13  ;;  %p3504_p13 = pnand %p3503_p12, %p3497_p9 }
  0x6c   :  { %2802 = vmatprep.subr.bf16.mxu1 %v2801_v36  ;;  %v204_v11 = vld [vmem:[#allocation4 + $0x150] sm:$0xff]  ;;  %v2813_v15 = vpack.c.bf16 %v208_v7, %v205_v6  ;;  %v207_v16 = vld [vmem:[#allocation4 + $0x168] sm:$0xff]  ;;  %v459_v17 = vld [vmem:[#allocation7 + $0xf8] sm:$0xff]  ;;  %v3724_v24 = vpack.c.bf16 %v455_v14, %v452_v13  ;;  %v103_v36 = vstv %s3702_s9  ;;  %vm96_vm2 = vcmp.eq.s32.totalorder %v3727_v26, %v3734_v30 }
  0x6d   :  { %v462_v18 = vld [vmem:[#allocation7 + $0x110] sm:$0xff]  ;;  %v167_v22 = vld [vmem:[#allocation4 + $0x28] sm:$0xff]  ;;  %v2815_v25 = vpack.c.bf16 %v207_v16, %v204_v11  ;;  %v170_v32 = vld [vmem:[#allocation4 + $0x40] sm:$0xff]  ;;  %v3752_v46 = vsel %vm92_vm1, %v103_v36, %v101_v35  ;;  %v3801_v11 = vsel %vm92_vm1, %v121_v5, %v119_v4  ;;  %v128_v14 = vsel %vm88_vm0, %v127_v8, 4294967295 }
  0x6e   :  { %2860 = vmatpush1.bf16.msra.mxu0 %v3697_v59  ;;  %v164_v21 = vld [vmem:[#allocation4 + $0x10] sm:$0xff]  ;;  %v3730_v27 = vpack.c.bf16 %v462_v18, %v459_v17  ;;  %v461_v29 = vld [vmem:[#allocation7 + $0x108] sm:$0xff]  ;;  %v173_v37 = vld [vmem:[#allocation4 + $0x58] sm:$0xff]  ;;  %vm105_vm3 = vcmp.eq.s32.totalorder %v3727_v26, %v3752_v46  ;;  %v136_v18 = vstv %s3767_s16  ;;  %vm123_vm5 = vcmp.eq.s32.totalorder %v3727_v26, %v3801_v11 }
  0x6f   :  { %2804 = vmatpush1.bf16.msra.mxu1 %v2803_v47  ;;  %2862 = vmatprep.subr.bf16.mxu0 %v3700_v62  ;;  %v458_v28 = vld [vmem:[#allocation7 + $0xf0] sm:$0xff]  ;;  %v2817_v31 = vpack.c.bf16 %v167_v22, %v164_v21  ;;  %v465_v38 = vld [vmem:[#allocation7 + $0x128] sm:$0xff]  ;;  %v468_v39 = vld [vmem:[#allocation7 + $0x140] sm:$0xff]  ;;  %v2821_v47 = vpack.c.bf16 %v173_v37, %v170_v32  ;;  %v137_v21 = vsel %vm88_vm0, %v136_v18, 4294967295  ;;  %v139_v22 = vstv %s3784_s17 }
  0x70   :  { %2806 = vmatprep.subr.bf16.mxu1 %v2805_v52  ;;  %v3745_v41 = vpack.c.bf16 %v461_v29, %v458_v28  ;;  %v464_v43 = vld [vmem:[#allocation7 + $0x120] sm:$0xff]  ;;  %v467_v44 = vld [vmem:[#allocation7 + $0x138] sm:$0xff]  ;;  %v176_v48 = vld [vmem:[#allocation4 + $0x70] sm:$0xff]  ;;  %v3754_v50 = vpack.c.bf16 %v468_v39, %v465_v38  ;;  %v112_v52 = vstv %s3718_s11  ;;  %v145_v28 = vstv %s3792_s18 }
  0x71   :  { %v179_v53 = vld [vmem:[#allocation4 + $0x88] sm:$0xff]  ;;  %v471_v54 = vld [vmem:[#allocation7 + $0x158] sm:$0xff]  ;;  %v474_v55 = vld [vmem:[#allocation7 + $0x170] sm:$0xff]  ;;  %v3776_v1 = vsel %vm92_vm1, %v112_v52, %v110_v51  ;;  %v3842_v29 = vsel %vm92_vm1, %v139_v22, %v137_v21  ;;  %v146_v32 = vsel %vm88_vm0, %v145_v28, 4294967295  ;;  %v148_v35 = vstv %s3807_s19 }
  0x72   :  { %2864 = vmatpush1.bf16.msra.mxu0 %v3709_v9  ;;  %v470_v61 = vld [vmem:[#allocation7 + $0x150] sm:$0xff]  ;;  %v473_v63 = vld [vmem:[#allocation7 + $0x168] sm:$0xff]  ;;  %v3779_v3 = vpack.c.bf16 %v474_v55, %v471_v54  ;;  %v182_v6 = vld [vmem:[#allocation4 + $0xa0] sm:$0xff]  ;;  %vm114_vm4 = vcmp.eq.s32.totalorder %v3727_v26, %v3776_v1  ;;  %v154_v38 = vstv %s3815_s20  ;;  %vm141_vm7 = vcmp.eq.s32.totalorder %v3727_v26, %v3842_v29 }
  0x73   :  { %2808 = vmatpush1.bf16.msra.mxu1 %v2807_v60  ;;  %2866 = vmatprep.subr.bf16.mxu0 %v3712_v12  ;;  %v3769_v60 = vpack.c.bf16 %v467_v44, %v464_v43  ;;  %v185_v7 = vld [vmem:[#allocation4 + $0xb8] sm:$0xff]  ;;  %v188_v16 = vld [vmem:[#allocation4 + $0xd0] sm:$0xff]  ;;  %v191_v17 = vld [vmem:[#allocation4 + $0xe8] sm:$0xff]  ;;  %v149_v39 = vsel %vm92_vm1, %v148_v35, %v146_v32  ;;  %v155_v43 = vsel %vm88_vm0, %v154_v38, 4294967295  ;;  %v157_v44 = vstv %s3828_s21 }
  0x74   :  { %2810 = vmatprep.subr.bf16.mxu1 %v2809_v2  ;;  %v2825_v2 = vpack.c.bf16 %v179_v53, %v176_v48  ;;  %v2829_v13 = vpack.c.bf16 %v185_v7, %v182_v6  ;;  %v2833_v20 = vpack.c.bf16 %v191_v17, %v188_v16  ;;  %v194_v23 = vld [vmem:[#allocation4 + $0x100] sm:$0xff]  ;;  %v200_v36 = vld [vmem:[#allocation4 + $0x130] sm:$0xff]  ;;  %v203_v37 = vld [vmem:[#allocation4 + $0x148] sm:$0xff]  ;;  %vm150_vm8 = vcmp.eq.s32.totalorder %v3727_v26, %v149_v39 }
  0x75   :  { %v2841_v40 = vpack.c.bf16 %v203_v37, %v200_v36  ;;  %v209_v48 = vld [vmem:[#allocation4 + $0x178] sm:$0xff]  ;;  %v158_v51 = vsel %vm92_vm1, %v157_v44, %v155_v43  ;;  %v430_v53 = vld [vmem:[#allocation7 + $0x10] sm:$0xff]  ;;  %v433_v54 = vld [vmem:[#allocation7 + $0x28] sm:$0xff]  ;;  %v4558_v57 = vmov 0.0|0.0   ;;  %v483_v28 = vadd.s32 128, %v3727_v26 }
  0x76   :  { %2868 = vmatpush1.bf16.msra.mxu0 %v3724_v24  ;;  %vm159_vm9 = vcmp.eq.s32.totalorder %v3727_v26, %v158_v51  ;;  %v3889_v55 = vpack.c.bf16 %v433_v54, %v430_v53  ;;  %v445_v4 = vld [vmem:[#allocation7 + $0x88] sm:$0xff]  ;;  %v448_v1 = vld [vmem:[#allocation7 + $0xa0] sm:$0xff]  ;;  %v451_v5 = vld [vmem:[#allocation7 + $0xb8] sm:$0xff] }
  0x77   :  { %2812 = vmatpush1.bf16.msra.mxu1 %v2811_v10  ;;  %2870 = vmatprep.subr.bf16.mxu0 %v3730_v27  ;;  %v3794_v10 = vpack.c.bf16 %v473_v63, %v470_v61  ;;  %v436_v61 = vld [vmem:[#allocation7 + $0x40] sm:$0xff]  ;;  %v439_v63 = vld [vmem:[#allocation7 + $0x58] sm:$0xff]  ;;  %v3930_v6 = vpack.c.bf16 %v451_v5, %v448_v1  ;;  %v454_v7 = vld [vmem:[#allocation7 + $0xd0] sm:$0xff]  ;;  %v486_v35 = vand.u32 127, %v483_v28 }
  0x78   :  { %2814 = vmatprep.subr.bf16.mxu1 %v2813_v15  ;;  %v130_v15 = vstv %s3759_s15  ;;  %v3903_v30 = vpack.c.bf16 %v439_v63, %v436_v61  ;;  %v457_v8 = vld [vmem:[#allocation7 + $0xe8] sm:$0xff]  ;;  %v466_v16 = vld [vmem:[#allocation7 + $0x130] sm:$0xff]  ;;  %v472_v18 = vld [vmem:[#allocation7 + $0x160] sm:$0xff] }
  0x79   :  { %v3822_v19 = vsel %vm92_vm1, %v130_v15, %v128_v14  ;;  %v3938_v11 = vpack.c.bf16 %v457_v8, %v454_v7  ;;  %v463_v14 = vld [vmem:[#allocation7 + $0x118] sm:$0xff]  ;;  %vm3986_vm12 = vcmp.lt.s32.totalorder %v486_v35, 32 }
  0x7a   :  { %2872 = vmatpush1.bf16.msra.mxu0 %v3745_v41  ;;  %vm132_vm6 = vcmp.eq.s32.totalorder %v3727_v26, %v3822_v19  ;;  %v475_v19 = vld [vmem:[#allocation7 + $0x178] sm:$0xff] }
  0x7b   :  { %2816 = vmatpush1.bf16.msra.mxu1 %v2815_v25  ;;  %2874 = vmatprep.subr.bf16.mxu0 %v3754_v50  ;;  %v197_v25 = vld [vmem:[#allocation4 + $0x118] sm:$0xff] }
  0x7c   :  { %2818 = vmatprep.subr.bf16.mxu1 %v2817_v31 }
  0x7e   :  { %2215 = vmatmul.mubr.msk.f32.vlgmr.msra.gmra.mrb[0].mxu1 %vm96_vm2, %v3562_v56  ;;  %2876 = vmatpush1.bf16.msra.mxu0 %v3769_v60 }
  0x7f   :  { %2820 = vmatpush3.bf16.msra.mxu1 %v2817_v31  ;;  %280 = vmatprep.mubr.f32.mxu1 %v4556_v0  ;;  %v2837_v31 = vpack.c.bf16 %v197_v25, %v194_v23 }
  0x80   :  { %2822 = vmatprep.subr.bf16.mxu1 %v2821_v47  ;;  %2878 = vmatprep.subr.bf16.mxu0 %v3779_v3 }
  0x82   :  { %2216 = vmatmul.mubr.msk.f32.gmra.mrb[2].mxu1 %vm105_vm3, %v3562_v56  ;;  %2880 = vmatpush1.bf16.msra.mxu0 %v3794_v10 }
  0x83   :  { %2824 = vmatpush3.bf16.msra.mxu1 %v2821_v47  ;;  %286 = vmatprep.mubr.f32.mxu1 %v4556_v0  ;;  %v206_v47 = vld [vmem:[#allocation4 + $0x160] sm:$0xff] }
  0x84   :  { %2826 = vmatprep.subr.bf16.mxu1 %v2825_v2  ;;  %2906 = vmatprep.subr.bf16.mxu0 %v3674_v33  ;;  %v2845_v52 = vpack.c.bf16 %v209_v48, %v206_v47 }
  0x85   :  { %560 = vmatmul.mubr.f32.vlgmr.msra.gmra.mrb[0].mxu0 %v4556_v0 }
  0x86   :  { %2217 = vmatmul.mubr.msk.f32.gmra.mrb[4].mxu1 %vm114_vm4, %v3562_v56  ;;  %2908 = vmatpush1.bf16.msra.mxu0 %v3676_v34 }
  0x87   :  { %2828 = vmatpush3.bf16.msra.mxu1 %v2825_v2  ;;  %292 = vmatprep.mubr.f32.mxu1 %v4556_v0  ;;  %v442_v2 = vld [vmem:[#allocation7 + $0x70] sm:$0xff] }
  0x88   :  { %2830 = vmatprep.subr.bf16.mxu1 %v2829_v13  ;;  %2910 = vmatprep.subr.bf16.mxu0 %v3679_v42  ;;  %v3917_v46 = vpack.c.bf16 %v445_v4, %v442_v2  ;;  %v4116_v2 = vld [vmem:[%s4551_s3] ss:$0 sm:$0xff]  ;;  %s3565_s3 = smov 96  }
  0x89   :  { %721 = vmatprep.mubr.f32.mxu0 %v4556_v0 }
  0x8a   :  { %2218 = vmatmul.mubr.msk.f32.gmra.mrb[6].mxu1 %vm123_vm5, %v3562_v56  ;;  %2912 = vmatpush1.bf16.msra.mxu0 %v3684_v45 }
  0x8b   :  { %2832 = vmatpush3.bf16.msra.mxu1 %v2829_v13  ;;  %298 = vmatprep.mubr.f32.mxu1 %v4556_v0  ;;  %v460_v13 = vld [vmem:[#allocation7 + $0x100] sm:$0xff] }
  0x8c   :  { %2834 = vmatprep.subr.bf16.mxu1 %v2833_v20  ;;  %2914 = vmatprep.subr.bf16.mxu0 %v3687_v49  ;;  %v3944_v15 = vpack.c.bf16 %v463_v14, %v460_v13 }
  0x8e   :  { %2219 = vmatmul.mubr.msk.f32.gmra.mrb[8].mxu1 %vm132_vm6, %v3562_v56  ;;  %2916 = vmatpush1.bf16.msra.mxu0 %v3697_v59 }
  0x8f   :  { %2836 = vmatpush3.bf16.msra.mxu1 %v2833_v20  ;;  %304 = vmatprep.mubr.f32.mxu1 %v4556_v0  ;;  %v3952_v20 = vpack.c.bf16 %v475_v19, %v472_v18 }
  0x90   :  { %2838 = vmatprep.subr.bf16.mxu1 %v2837_v31  ;;  %2918 = vmatprep.subr.bf16.mxu0 %v3700_v62 }
  0x92   :  { %2220 = vmatmul.mubr.msk.f32.gmra.mrb[10].mxu1 %vm141_vm7, %v3562_v56  ;;  %2920 = vmatpush1.bf16.msra.mxu0 %v3709_v9 }
  0x93   :  { %2840 = vmatpush3.bf16.msra.mxu1 %v2837_v31  ;;  %310 = vmatprep.mubr.f32.mxu1 %v4556_v0 }
  0x94   :  { %2842 = vmatprep.subr.bf16.mxu1 %v2841_v40  ;;  %2922 = vmatprep.subr.bf16.mxu0 %v3712_v12 }
  0x96   :  { %2221 = vmatmul.mubr.msk.f32.gmra.mrb[12].mxu1 %vm150_vm8, %v3562_v56  ;;  %2924 = vmatpush1.bf16.msra.mxu0 %v3724_v24 }
  0x97   :  { %2844 = vmatpush3.bf16.msra.mxu1 %v2841_v40  ;;  %316 = vmatprep.mubr.f32.mxu1 %v4556_v0 }
  0x98   :  { %2846 = vmatprep.subr.bf16.mxu1 %v2845_v52  ;;  %2926 = vmatprep.subr.bf16.mxu0 %v3730_v27 }
  0x9a   :  { %2222 = vmatmul.mubr.msk.f32.gmra.mrb[14].mxu1 %vm159_vm9, %v3562_v56  ;;  %2928 = vmatpush1.bf16.msra.mxu0 %v3745_v41 }
  0x9b   :  { %2848 = vmatpush3.bf16.msra.mxu1 %v2845_v52  ;;  %2449 = vmatprep.mubr.msk.f32.mxu1 %vm96_vm2, %v3562_v56 }
  0x9c   :  { %2881 = vmatprep.subr.bf16.mxu1 %v4558_v57  ;;  %2930 = vmatprep.subr.bf16.mxu0 %v3754_v50 }
  0x9e   :  { %2450 = vmatmul.mubr.msk.f32.vlgmr.msra.gmra.mrb[16].mxu1 %vm105_vm3, %v3562_v56  ;;  %2932 = vmatpush1.bf16.msra.mxu0 %v3769_v60 }
  0x9f   :  { %2883 = vmatpush3.bf16.msra.mxu1 %v3889_v55  ;;  %2452 = vmatprep.mubr.msk.f32.mxu1 %vm114_vm4, %v3562_v56 }
  0xa0   :  { %2884 = vmatprep.subr.bf16.mxu1 %v4558_v57  ;;  %2934 = vmatprep.subr.bf16.mxu0 %v3779_v3 }
  0xa2   :  { %2453 = vmatmul.mubr.msk.f32.gmra.mrb[18].mxu1 %vm123_vm5, %v3562_v56  ;;  %2936 = vmatpush1.bf16.msra.mxu0 %v3794_v10 }
  0xa3   :  { %2886 = vmatpush3.bf16.msra.mxu1 %v3903_v30  ;;  %2455 = vmatprep.mubr.msk.f32.mxu1 %vm132_vm6, %v3562_v56 }
  0xa4   :  { %2887 = vmatprep.subr.bf16.mxu1 %v4558_v57  ;;  %2962 = vmatprep.subr.bf16.mxu0 %v3674_v33 }
  0xa6   :  { %2456 = vmatmul.mubr.msk.f32.gmra.mrb[20].mxu1 %vm141_vm7, %v3562_v56 }
  0xa7   :  { %2889 = vmatpush3.bf16.msra.mxu1 %v3917_v46  ;;  %2458 = vmatprep.mubr.msk.f32.mxu1 %vm150_vm8, %v3562_v56 }
  0xa8   :  { %2890 = vmatprep.subr.bf16.mxu1 %v4558_v57 }
  0xaa   :  { %2459 = vmatmul.mubr.msk.f32.gmra.mrb[22].mxu1 %vm159_vm9, %v3562_v56  ;;  %v469_v56 = vld [vmem:[#allocation7 + $0x148] sm:$0xff] }
  0xab   :  { %2892 = vmatpush3.bf16.msra.mxu1 %v3930_v6  ;;  %2493 = vmatprep.mubr.msk.f32.mxu1 %vm3564_vm10, %v4556_v0  ;;  %v3948_v17 = vpack.c.bf16 %v469_v56, %v466_v16 }
  0xac   :  { %2893 = vmatprep.subr.bf16.mxu1 %v4558_v57 }
  0xaf   :  { %2895 = vmatpush3.bf16.msra.mxu1 %v3938_v11 }
  0xb0   :  { %2896 = vmatprep.subr.bf16.mxu1 %v4558_v57 }
  0xb3   :  { %2898 = vmatpush3.bf16.msra.mxu1 %v3944_v15 }
  0xb4   :  { %2899 = vmatprep.subr.bf16.mxu1 %v4558_v57 }
  0xb7   :  { %2901 = vmatpush3.bf16.msra.mxu1 %v3948_v17 }
  0xb8   :  { %2902 = vmatprep.subr.bf16.mxu1 %v4558_v57 }
  0xbb   :  { %2904 = vmatpush3.bf16.msra.mxu1 %v3952_v20 }
  0xbc   :  { %2937 = vmatprep.subr.bf16.mxu1 %v4558_v57 }
  0xbe   :  { %2494 = vmatmul.mubr.f32.vlgmr.msra.gmra.mrb[24].mxu1 %v4556_v0 }
  0xbf   :  { %2939 = vmatpush3.bf16.msra.mxu1 %v3889_v55  ;;  %2528 = vmatprep.mubr.msk.f32.mxu1 %vm3564_vm10, %v4556_v0 }
  0xc0   :  { %2940 = vmatprep.subr.bf16.mxu1 %v4558_v57 }
  0xc3   :  { %2942 = vmatpush3.bf16.msra.mxu1 %v3903_v30 }
  0xc4   :  { %2943 = vmatprep.subr.bf16.mxu1 %v4558_v57 }
  0xc7   :  { %2945 = vmatpush3.bf16.msra.mxu1 %v3917_v46 }
  0xc8   :  { %2946 = vmatprep.subr.bf16.mxu1 %v4558_v57 }
  0xcb   :  { %2948 = vmatpush3.bf16.msra.mxu1 %v3930_v6 }
  0xcc   :  { %2949 = vmatprep.subr.bf16.mxu1 %v4558_v57 }
  0xcf   :  { %2951 = vmatpush3.bf16.msra.mxu1 %v3938_v11 }
  0xd0   :  { %2952 = vmatprep.subr.bf16.mxu1 %v4558_v57 }
  0xd3   :  { %2954 = vmatpush3.bf16.msra.mxu1 %v3944_v15 }
  0xd4   :  { %2955 = vmatprep.subr.bf16.mxu1 %v4558_v57 }
  0xd7   :  { %2957 = vmatpush3.bf16.msra.mxu1 %v3948_v17 }
  0xd8   :  { %2958 = vmatprep.subr.bf16.mxu1 %v4558_v57 }
  0xdb   :  { %2960 = vmatpush3.bf16.msra.mxu1 %v3952_v20 }
  0xdc   :  { %2993 = vmatprep.subr.bf16.mxu1 %v4558_v57 }
 0x151   :  { %v276_v21 = vpop.f32.mrb[0].mxu1 }
 0x152   :  { %v3976_v22 = vpop.f32.mrb[1].mxu1 }
 0x153   :  { %4569 = vst [vmem:[#allocation23_spill] sm:$0xff] %v3976_v22 }
 0x155   :  { %v282_v23 = vpop.f32.mrb[2].mxu1 }
 0x156   :  { %v3978_v25 = vpop.f32.mrb[3].mxu1 }
 0x158   :  { %v561_v32 = vpop.f32.mrb[0].mxu0 }
 0x159   :  { %v288_v29 = vpop.f32.mrb[4].mxu1  ;;  %v563_v37 = vpop.f32.mrb[1].mxu0 }
 0x15a   :  { %v3981_v31 = vpop.f32.mrb[5].mxu1 }
 0x15d   :  { %v294_v36 = vpop.f32.mrb[6].mxu1 }
 0x15e   :  { %v3983_v38 = vpop.f32.mrb[7].mxu1 }
 0x161   :  { %v300_v40 = vpop.f32.mrb[8].mxu1 }
 0x162   :  { %v3990_v43 = vpop.f32.mrb[9].mxu1  ;;  %v3994_v44 = vsel %vm488_vm11, %v294_v36, %v300_v40  ;;  %v3998_v47 = vsel %vm488_vm11, %v300_v40, %v294_v36  ;;  %v484_v36 = vadd.s32 256, %v3727_v26 }
 0x165   :  { %v306_v52 = vpop.f32.mrb[10].mxu1 }
 0x166   :  { %v4008_v53 = vpop.f32.mrb[11].mxu1  ;;  %v4012_v54 = vsel %vm488_vm11, %v288_v29, %v306_v52  ;;  %v4016_v61 = vsel %vm488_vm11, %v306_v52, %v288_v29 }
 0x169   :  { %v312_v4 = vpop.f32.mrb[12].mxu1 }
 0x16a   :  { %v4026_v1 = vpop.f32.mrb[13].mxu1  ;;  %v4030_v5 = vsel %vm488_vm11, %v282_v23, %v312_v4  ;;  %v4034_v7 = vsel %vm488_vm11, %v312_v4, %v282_v23 }
 0x16d   :  { %v318_v14 = vpop.f32.mrb[14].mxu1 }
 0x16e   :  { %v4044_v16 = vpop.f32.mrb[15].mxu1  ;;  %v492_v56 = vsel %vm488_vm11, %v276_v21, %v318_v14  ;;  %v4050_v18 = vsel %vm488_vm11, %v318_v14, %v276_v21 }
 0x16f   :  { %4572 = vst [vmem:[#allocation24_spill] sm:$0xff] %v4044_v16  ;;  %v636_v19 = vadd.f32 %v561_v32, %v492_v56  ;;  %v493_v23 = vsel %vm3986_vm12, %v3976_v22, %v4044_v16  ;;  %v487_v32 = vand.u32 127, %v484_v36 }
 0x170   :  { %v641_v29 = vadd.f32 %v563_v37, %v493_v23 }
 0x171   :  { %v4060_v35 = vpop.f32.mrb[16].mxu1  ;;  %vm4071_vm13 = vcmp.lt.s32.totalorder %v487_v32, 32  ;;  %v637_v28 = vmul.f32 0.5, %v636_v19 }
 0x172   :  { %v4063_v40 = vpop.f32.mrb[17].mxu1  ;;  %v642_v36 = vmul.f32 0.5, %v641_v29 }
 0x173   :  { %4573 = vst [vmem:[#allocation25_spill] sm:$0xff] %v4063_v40  ;;  %3348 = vtanh.f32 %v637_v28 }
 0x174   :  { %3350 = vtanh.f32 %v642_v36 }
 0x175   :  { %v4065_v21 = vpop.f32.mrb[18].mxu1 }
 0x176   :  { %v4067_v52 = vpop.f32.mrb[19].mxu1 }
 0x179   :  { %v4069_v4 = vpop.f32.mrb[20].mxu1 }
 0x17a   :  { %v4083_v23 = vpop.f32.mrb[21].mxu1 }
 0x17d   :  { %v4093_v13 = vpop.f32.mrb[22].mxu1  ;;  %v3349_v48 = vpop.eup %3348 }
 0x17e   :  { %4576 = vst [vmem:[#allocation26_spill] sm:$0xff] %v4093_v13  ;;  %v494_v56 = vsel %vm4071_vm13, %v4063_v40, %v4093_v13  ;;  %v4103_v51 = vpop.f32.mrb[23].mxu1  ;;  %v639_v37 = vadd.f32 1.0, %v3349_v48  ;;  %v3351_v58 = vpop.eup %3350 }
 0x17f   :  { %v644_v19 = vadd.f32 1.0, %v3351_v58  ;;  %v4578_v58 = vmov 0.0  }
 0x180   :  { %v640_v8 = vmul.f32 0.5, %v639_v37  ;;  %v4579_v37 = vsel %vm3986_vm12, %v3978_v25, %v4026_v1 }
 0x181   :  { %v645_v28 = vmul.f32 0.5, %v644_v19 }
 0x183   :  { %v650_v29 = vsub.f32 1.0, %v645_v28  ;;  %v652_v36 = vmul.f32 0.0, %v645_v28 }
 0x191   :  { %v632_v63 = vpop.f32.mrb[24].mxu1 }
 0x192   :  { %v646_v0 = vadd.f32 %v4116_v2, %v632_v63  ;;  %v2495_v32 = vpop.f32.mrb[25].mxu1 }
 0x194   :  { %v647_v57 = vmul.f32 %v646_v0, %v640_v8  ;;  %v4577_v0 = vmov 0.0|0.0  }
 0x196   :  { %v648_v26 = vadd.f32 %v647_v57, %v494_v56 }
 0x198   :  { %3352 = vtanh.f32 %v648_v26 }
 0x1a2   :  { %v3353_v40 = vpop.eup %3352 }
 0x1a3   :  { %v651_v48 = vmul.f32 %v3353_v40, %v650_v29 }
 0x1a5   :  { %v4119_v13 = vadd.f32 %v652_v36, %v651_v48 }
 0x1a7   :  { %722 = vmatmul.mubr.f32.vlgmr.msra.gmra.mrb[2].mxu0 %v4119_v13  ;;  %2529 = vmatmul.mubr.f32.vlgmr.msra.gmra.mrb[26].mxu1 %v4119_v13 }
 0x1a8   :  { %2964 = vmatpush1.bf16.msra.mxu0 %v3676_v34  ;;  %2995 = vmatpush3.bf16.msra.mxu1 %v3889_v55 }
 0x1a9   :  { %2966 = vmatprep.subr.bf16.mxu0 %v3679_v42  ;;  %2996 = vmatprep.subr.bf16.mxu1 %v4577_v0 }
 0x1aa   :  { %883 = vmatprep.mubr.f32.mxu0 %v4578_v58  ;;  %2563 = vmatprep.mubr.msk.f32.mxu1 %vm3564_vm10, %v4578_v58 }
 0x1ac   :  { %2968 = vmatpush1.bf16.msra.mxu0 %v3684_v45  ;;  %2998 = vmatpush3.bf16.msra.mxu1 %v3903_v30 }
 0x1ad   :  { %2970 = vmatprep.subr.bf16.mxu0 %v3687_v49  ;;  %2999 = vmatprep.subr.bf16.mxu1 %v4577_v0 }
 0x1b0   :  { %2972 = vmatpush1.bf16.msra.mxu0 %v3697_v59  ;;  %3001 = vmatpush3.bf16.msra.mxu1 %v3917_v46 }
 0x1b1   :  { %2974 = vmatprep.subr.bf16.mxu0 %v3700_v62  ;;  %3002 = vmatprep.subr.bf16.mxu1 %v4577_v0 }
 0x1b4   :  { %2976 = vmatpush1.bf16.msra.mxu0 %v3709_v9  ;;  %3004 = vmatpush3.bf16.msra.mxu1 %v3930_v6 }
 0x1b5   :  { %2978 = vmatprep.subr.bf16.mxu0 %v3712_v12  ;;  %3005 = vmatprep.subr.bf16.mxu1 %v4577_v0 }
 0x1b8   :  { %2980 = vmatpush1.bf16.msra.mxu0 %v3724_v24  ;;  %3007 = vmatpush3.bf16.msra.mxu1 %v3938_v11 }
 0x1b9   :  { %2982 = vmatprep.subr.bf16.mxu0 %v3730_v27  ;;  %3008 = vmatprep.subr.bf16.mxu1 %v4577_v0 }
 0x1bc   :  { %2984 = vmatpush1.bf16.msra.mxu0 %v3745_v41  ;;  %3010 = vmatpush3.bf16.msra.mxu1 %v3944_v15 }
 0x1bd   :  { %2986 = vmatprep.subr.bf16.mxu0 %v3754_v50  ;;  %3011 = vmatprep.subr.bf16.mxu1 %v4577_v0 }
 0x1c0   :  { %2988 = vmatpush1.bf16.msra.mxu0 %v3769_v60  ;;  %3013 = vmatpush3.bf16.msra.mxu1 %v3948_v17 }
 0x1c1   :  { %2990 = vmatprep.subr.bf16.mxu0 %v3779_v3  ;;  %3014 = vmatprep.subr.bf16.mxu1 %v4577_v0 }
 0x1c4   :  { %2992 = vmatpush1.bf16.msra.mxu0 %v3794_v10  ;;  %3016 = vmatpush3.bf16.msra.mxu1 %v3952_v20 }
 0x1c5   :  { %3018 = vmatprep.subr.bf16.mxu0 %v3674_v33  ;;  %3049 = vmatprep.subr.bf16.mxu1 %v4577_v0 }
 0x27a   :  { %v723_v26 = vpop.f32.mrb[2].mxu0  ;;  %v794_v57 = vpop.f32.mrb[26].mxu1 }
 0x27b   :  { %v798_v63 = vadd.f32 %v723_v26, %v4030_v5  ;;  %v725_v8 = vpop.f32.mrb[3].mxu0  ;;  %v2530_v40 = vpop.f32.mrb[27].mxu1  ;;  %v808_v48 = vadd.f32 %v4116_v2, %v794_v57  ;;  %v4580_v5 = vsel %vm4071_vm13, %v4060_v35, %v4103_v51 }
 0x27c   :  { %v803_v56 = vadd.f32 %v725_v8, %v4579_v37 }
 0x27d   :  { %v799_v32 = vmul.f32 0.5, %v798_v63 }
 0x27e   :  { %v804_v19 = vmul.f32 0.5, %v803_v56 }
 0x27f   :  { %3354 = vtanh.f32 %v799_v32 }
 0x280   :  { %3356 = vtanh.f32 %v804_v19 }
 0x289   :  { %v3355_v28 = vpop.eup %3354 }
 0x28a   :  { %v801_v29 = vadd.f32 1.0, %v3355_v28  ;;  %v3357_v16 = vpop.eup %3356 }
 0x28b   :  { %v806_v40 = vadd.f32 1.0, %v3357_v16 }
 0x28c   :  { %v802_v36 = vmul.f32 0.5, %v801_v29 }
 0x28d   :  { %v807_v8 = vmul.f32 0.5, %v806_v40 }
 0x28e   :  { %v809_v22 = vmul.f32 %v808_v48, %v802_v36  ;;  %v4581_v36 = vsel %vm3986_vm12, %v3981_v31, %v4008_v53 }
 0x28f   :  { %v812_v63 = vsub.f32 1.0, %v807_v8  ;;  %v814_v32 = vmul.f32 %v807_v8, %v4119_v13 }
 0x290   :  { %v810_v26 = vadd.f32 %v809_v22, %v4580_v5 }
 0x292   :  { %3358 = vtanh.f32 %v810_v26 }
 0x29c   :  { %v3359_v37 = vpop.eup %3358 }
 0x29d   :  { %v813_v56 = vmul.f32 %v3359_v37, %v812_v63 }
 0x29f   :  { %v4171_v19 = vadd.f32 %v814_v32, %v813_v56 }
 0x2a1   :  { %884 = vmatmul.mubr.f32.vlgmr.msra.gmra.mrb[4].mxu0 %v4171_v19  ;;  %2564 = vmatmul.mubr.f32.vlgmr.msra.gmra.mrb[28].mxu1 %v4171_v19 }
 0x2a2   :  { %3020 = vmatpush1.bf16.msra.mxu0 %v3676_v34  ;;  %3051 = vmatpush3.bf16.msra.mxu1 %v3889_v55 }
 0x2a3   :  { %3022 = vmatprep.subr.bf16.mxu0 %v3679_v42  ;;  %3052 = vmatprep.subr.bf16.mxu1 %v4577_v0 }
 0x2a4   :  { %1045 = vmatprep.mubr.f32.mxu0 %v4578_v58  ;;  %2598 = vmatprep.mubr.msk.f32.mxu1 %vm3564_vm10, %v4578_v58 }
 0x2a6   :  { %3024 = vmatpush1.bf16.msra.mxu0 %v3684_v45  ;;  %3054 = vmatpush3.bf16.msra.mxu1 %v3903_v30 }
 0x2a7   :  { %3026 = vmatprep.subr.bf16.mxu0 %v3687_v49  ;;  %3055 = vmatprep.subr.bf16.mxu1 %v4577_v0 }
 0x2aa   :  { %3028 = vmatpush1.bf16.msra.mxu0 %v3697_v59  ;;  %3057 = vmatpush3.bf16.msra.mxu1 %v3917_v46 }
 0x2ab   :  { %3030 = vmatprep.subr.bf16.mxu0 %v3700_v62  ;;  %3058 = vmatprep.subr.bf16.mxu1 %v4577_v0 }
 0x2ae   :  { %3032 = vmatpush1.bf16.msra.mxu0 %v3709_v9  ;;  %3060 = vmatpush3.bf16.msra.mxu1 %v3930_v6 }
 0x2af   :  { %3034 = vmatprep.subr.bf16.mxu0 %v3712_v12  ;;  %3061 = vmatprep.subr.bf16.mxu1 %v4577_v0 }
 0x2b2   :  { %3036 = vmatpush1.bf16.msra.mxu0 %v3724_v24  ;;  %3063 = vmatpush3.bf16.msra.mxu1 %v3938_v11 }
 0x2b3   :  { %3038 = vmatprep.subr.bf16.mxu0 %v3730_v27  ;;  %3064 = vmatprep.subr.bf16.mxu1 %v4577_v0 }
 0x2b6   :  { %3040 = vmatpush1.bf16.msra.mxu0 %v3745_v41  ;;  %3066 = vmatpush3.bf16.msra.mxu1 %v3944_v15 }
 0x2b7   :  { %3042 = vmatprep.subr.bf16.mxu0 %v3754_v50  ;;  %3067 = vmatprep.subr.bf16.mxu1 %v4577_v0 }
 0x2ba   :  { %3044 = vmatpush1.bf16.msra.mxu0 %v3769_v60  ;;  %3069 = vmatpush3.bf16.msra.mxu1 %v3948_v17 }
 0x2bb   :  { %3046 = vmatprep.subr.bf16.mxu0 %v3779_v3  ;;  %3070 = vmatprep.subr.bf16.mxu1 %v4577_v0 }
 0x2be   :  { %3048 = vmatpush1.bf16.msra.mxu0 %v3794_v10  ;;  %3072 = vmatpush3.bf16.msra.mxu1 %v3952_v20 }
 0x2bf   :  { %3074 = vmatprep.subr.bf16.mxu0 %v3674_v33  ;;  %3105 = vmatprep.subr.bf16.mxu1 %v4577_v0 }
 0x374   :  { %v885_v22 = vpop.f32.mrb[4].mxu0  ;;  %v956_v16 = vpop.f32.mrb[28].mxu1 }
 0x375   :  { %v960_v57 = vadd.f32 %v885_v22, %v4012_v54  ;;  %v887_v28 = vpop.f32.mrb[5].mxu0  ;;  %v2565_v29 = vpop.f32.mrb[29].mxu1  ;;  %v970_v37 = vadd.f32 %v4116_v2, %v956_v16  ;;  %v4582_v54 = vsel %vm4071_vm13, %v4067_v52, %v4069_v4 }
 0x376   :  { %v965_v48 = vadd.f32 %v887_v28, %v4581_v36 }
 0x377   :  { %v961_v5 = vmul.f32 0.5, %v960_v57 }
 0x378   :  { %v966_v26 = vmul.f32 0.5, %v965_v48 }
 0x379   :  { %3360 = vtanh.f32 %v961_v5 }
 0x37a   :  { %3362 = vtanh.f32 %v966_v26 }
 0x383   :  { %v3361_v40 = vpop.eup %3360 }
 0x384   :  { %v963_v8 = vadd.f32 1.0, %v3361_v40  ;;  %v3363_v32 = vpop.eup %3362 }
 0x385   :  { %v968_v29 = vadd.f32 1.0, %v3363_v32 }
 0x386   :  { %v964_v63 = vmul.f32 0.5, %v963_v8 }
 0x387   :  { %v969_v28 = vmul.f32 0.5, %v968_v29 }
 0x388   :  { %v971_v56 = vmul.f32 %v970_v37, %v964_v63 }
 0x389   :  { %v974_v57 = vsub.f32 1.0, %v969_v28  ;;  %v976_v5 = vmul.f32 %v969_v28, %v4171_v19 }
 0x38a   :  { %v972_v22 = vadd.f32 %v971_v56, %v4582_v54  ;;  %v4583_v56 = vsel %vm3986_vm12, %v3983_v38, %v3990_v43 }
 0x38c   :  { %3364 = vtanh.f32 %v972_v22 }
 0x396   :  { %v3365_v36 = vpop.eup %3364 }
 0x397   :  { %v975_v48 = vmul.f32 %v3365_v36, %v974_v57 }
 0x399   :  { %v4223_v26 = vadd.f32 %v976_v5, %v975_v48 }
 0x39b   :  { %1046 = vmatmul.mubr.f32.vlgmr.msra.gmra.mrb[6].mxu0 %v4223_v26  ;;  %2599 = vmatmul.mubr.f32.vlgmr.msra.gmra.mrb[30].mxu1 %v4223_v26 }
 0x39c   :  { %3076 = vmatpush1.bf16.msra.mxu0 %v3676_v34  ;;  %3107 = vmatpush3.bf16.msra.mxu1 %v3889_v55 }
 0x39d   :  { %3078 = vmatprep.subr.bf16.mxu0 %v3679_v42  ;;  %3108 = vmatprep.subr.bf16.mxu1 %v4577_v0 }
 0x39e   :  { %1207 = vmatprep.mubr.f32.mxu0 %v4578_v58  ;;  %2633 = vmatprep.mubr.msk.f32.mxu1 %vm3564_vm10, %v4578_v58 }
 0x3a0   :  { %3080 = vmatpush1.bf16.msra.mxu0 %v3684_v45  ;;  %3110 = vmatpush3.bf16.msra.mxu1 %v3903_v30 }
 0x3a1   :  { %3082 = vmatprep.subr.bf16.mxu0 %v3687_v49  ;;  %3111 = vmatprep.subr.bf16.mxu1 %v4577_v0 }
 0x3a4   :  { %3084 = vmatpush1.bf16.msra.mxu0 %v3697_v59  ;;  %3113 = vmatpush3.bf16.msra.mxu1 %v3917_v46 }
 0x3a5   :  { %3086 = vmatprep.subr.bf16.mxu0 %v3700_v62  ;;  %3114 = vmatprep.subr.bf16.mxu1 %v4577_v0 }
 0x3a8   :  { %3088 = vmatpush1.bf16.msra.mxu0 %v3709_v9  ;;  %3116 = vmatpush3.bf16.msra.mxu1 %v3930_v6 }
 0x3a9   :  { %3090 = vmatprep.subr.bf16.mxu0 %v3712_v12  ;;  %3117 = vmatprep.subr.bf16.mxu1 %v4577_v0 }
 0x3ac   :  { %3092 = vmatpush1.bf16.msra.mxu0 %v3724_v24  ;;  %3119 = vmatpush3.bf16.msra.mxu1 %v3938_v11 }
 0x3ad   :  { %3094 = vmatprep.subr.bf16.mxu0 %v3730_v27  ;;  %3120 = vmatprep.subr.bf16.mxu1 %v4577_v0 }
 0x3b0   :  { %3096 = vmatpush1.bf16.msra.mxu0 %v3745_v41  ;;  %3122 = vmatpush3.bf16.msra.mxu1 %v3944_v15 }
 0x3b1   :  { %3098 = vmatprep.subr.bf16.mxu0 %v3754_v50  ;;  %3123 = vmatprep.subr.bf16.mxu1 %v4577_v0 }
 0x3b4   :  { %3100 = vmatpush1.bf16.msra.mxu0 %v3769_v60  ;;  %3125 = vmatpush3.bf16.msra.mxu1 %v3948_v17 }
 0x3b5   :  { %3102 = vmatprep.subr.bf16.mxu0 %v3779_v3  ;;  %3126 = vmatprep.subr.bf16.mxu1 %v4577_v0 }
 0x3b8   :  { %3104 = vmatpush1.bf16.msra.mxu0 %v3794_v10  ;;  %3128 = vmatpush3.bf16.msra.mxu1 %v3952_v20 }
 0x3b9   :  { %3130 = vmatprep.subr.bf16.mxu0 %v3674_v33  ;;  %3161 = vmatprep.subr.bf16.mxu1 %v4577_v0 }
 0x46e   :  { %v1047_v16 = vpop.f32.mrb[6].mxu0  ;;  %v1118_v40 = vpop.f32.mrb[30].mxu1 }
 0x46f   :  { %v1122_v8 = vadd.f32 %v1047_v16, %v3994_v44  ;;  %v1049_v63 = vpop.f32.mrb[7].mxu0  ;;  %v2600_v37 = vpop.f32.mrb[31].mxu1  ;;  %v1132_v36 = vadd.f32 %v4116_v2, %v1118_v40  ;;  %v4584_v44 = vsel %vm4071_vm13, %v4065_v21, %v4083_v23 }
 0x470   :  { %v1127_v32 = vadd.f32 %v1049_v63, %v4583_v56 }
 0x471   :  { %v1123_v54 = vmul.f32 0.5, %v1122_v8 }
 0x472   :  { %v1128_v22 = vmul.f32 0.5, %v1127_v32 }
 0x473   :  { %3366 = vtanh.f32 %v1123_v54 }
 0x474   :  { %3368 = vtanh.f32 %v1128_v22 }
 0x47d   :  { %v3367_v29 = vpop.eup %3366 }
 0x47e   :  { %v1125_v28 = vadd.f32 1.0, %v3367_v29  ;;  %v3369_v5 = vpop.eup %3368 }
 0x47f   :  { %v1130_v37 = vadd.f32 1.0, %v3369_v5 }
 0x480   :  { %v1126_v57 = vmul.f32 0.5, %v1125_v28 }
 0x481   :  { %v1131_v63 = vmul.f32 0.5, %v1130_v37 }
 0x482   :  { %v1133_v48 = vmul.f32 %v1132_v36, %v1126_v57 }
 0x483   :  { %v1136_v8 = vsub.f32 1.0, %v1131_v63  ;;  %v1138_v54 = vmul.f32 %v1131_v63, %v4223_v26 }
 0x484   :  { %v1134_v16 = vadd.f32 %v1133_v48, %v4584_v44  ;;  %v4585_v48 = vsel %vm3986_vm12, %v3990_v43, %v3983_v38 }
 0x486   :  { %3370 = vtanh.f32 %v1134_v16 }
 0x490   :  { %v3371_v56 = vpop.eup %3370 }
 0x491   :  { %v1137_v32 = vmul.f32 %v3371_v56, %v1136_v8 }
 0x493   :  { %v4275_v22 = vadd.f32 %v1138_v54, %v1137_v32 }
 0x495   :  { %1208 = vmatmul.mubr.f32.vlgmr.msra.gmra.mrb[8].mxu0 %v4275_v22  ;;  %2634 = vmatmul.mubr.f32.vlgmr.msra.gmra.mrb[32].mxu1 %v4275_v22 }
 0x496   :  { %3132 = vmatpush1.bf16.msra.mxu0 %v3676_v34  ;;  %3163 = vmatpush3.bf16.msra.mxu1 %v3889_v55 }
 0x497   :  { %3134 = vmatprep.subr.bf16.mxu0 %v3679_v42  ;;  %3164 = vmatprep.subr.bf16.mxu1 %v4577_v0 }
 0x498   :  { %1369 = vmatprep.mubr.f32.mxu0 %v4578_v58  ;;  %2668 = vmatprep.mubr.msk.f32.mxu1 %vm3564_vm10, %v4578_v58 }
 0x49a   :  { %3136 = vmatpush1.bf16.msra.mxu0 %v3684_v45  ;;  %3166 = vmatpush3.bf16.msra.mxu1 %v3903_v30 }
 0x49b   :  { %3138 = vmatprep.subr.bf16.mxu0 %v3687_v49  ;;  %3167 = vmatprep.subr.bf16.mxu1 %v4577_v0 }
 0x49e   :  { %3140 = vmatpush1.bf16.msra.mxu0 %v3697_v59  ;;  %3169 = vmatpush3.bf16.msra.mxu1 %v3917_v46 }
 0x49f   :  { %3142 = vmatprep.subr.bf16.mxu0 %v3700_v62  ;;  %3170 = vmatprep.subr.bf16.mxu1 %v4577_v0 }
 0x4a2   :  { %3144 = vmatpush1.bf16.msra.mxu0 %v3709_v9  ;;  %3172 = vmatpush3.bf16.msra.mxu1 %v3930_v6 }
 0x4a3   :  { %3146 = vmatprep.subr.bf16.mxu0 %v3712_v12  ;;  %3173 = vmatprep.subr.bf16.mxu1 %v4577_v0 }
 0x4a6   :  { %3148 = vmatpush1.bf16.msra.mxu0 %v3724_v24  ;;  %3175 = vmatpush3.bf16.msra.mxu1 %v3938_v11 }
 0x4a7   :  { %3150 = vmatprep.subr.bf16.mxu0 %v3730_v27  ;;  %3176 = vmatprep.subr.bf16.mxu1 %v4577_v0 }
 0x4aa   :  { %3152 = vmatpush1.bf16.msra.mxu0 %v3745_v41  ;;  %3178 = vmatpush3.bf16.msra.mxu1 %v3944_v15 }
 0x4ab   :  { %3154 = vmatprep.subr.bf16.mxu0 %v3754_v50  ;;  %3179 = vmatprep.subr.bf16.mxu1 %v4577_v0 }
 0x4ae   :  { %3156 = vmatpush1.bf16.msra.mxu0 %v3769_v60  ;;  %3181 = vmatpush3.bf16.msra.mxu1 %v3948_v17 }
 0x4af   :  { %3158 = vmatprep.subr.bf16.mxu0 %v3779_v3  ;;  %3182 = vmatprep.subr.bf16.mxu1 %v4577_v0 }
 0x4b2   :  { %3160 = vmatpush1.bf16.msra.mxu0 %v3794_v10  ;;  %3184 = vmatpush3.bf16.msra.mxu1 %v3952_v20 }
 0x4b3   :  { %3186 = vmatprep.subr.bf16.mxu0 %v3674_v33  ;;  %3217 = vmatprep.subr.bf16.mxu1 %v4577_v0 }
 0x568   :  { %v1209_v40 = vpop.f32.mrb[8].mxu0  ;;  %v1280_v29 = vpop.f32.mrb[32].mxu1 }
 0x569   :  { %v1284_v28 = vadd.f32 %v1209_v40, %v3998_v47  ;;  %v1211_v57 = vpop.f32.mrb[9].mxu0  ;;  %v2635_v36 = vpop.f32.mrb[33].mxu1  ;;  %v1294_v56 = vadd.f32 %v4116_v2, %v1280_v29  ;;  %v4586_v47 = vsel %vm4071_vm13, %v4083_v23, %v4065_v21 }
 0x56a   :  { %v1289_v5 = vadd.f32 %v1211_v57, %v4585_v48 }
 0x56b   :  { %v1285_v44 = vmul.f32 0.5, %v1284_v28 }
 0x56c   :  { %v1290_v16 = vmul.f32 0.5, %v1289_v5 }
 0x56d   :  { %3372 = vtanh.f32 %v1285_v44 }
 0x56e   :  { %3374 = vtanh.f32 %v1290_v16 }
 0x577   :  { %v3373_v37 = vpop.eup %3372 }
 0x578   :  { %v1287_v63 = vadd.f32 1.0, %v3373_v37  ;;  %v3375_v54 = vpop.eup %3374  ;;  %v4587_v37 = vsel %vm3986_vm12, %v4008_v53, %v3981_v31 }
 0x579   :  { %v1292_v38 = vadd.f32 1.0, %v3375_v54 }
 0x57a   :  { %v1288_v8 = vmul.f32 0.5, %v1287_v63 }
 0x57b   :  { %v1293_v43 = vmul.f32 0.5, %v1292_v38 }
 0x57c   :  { %v1295_v32 = vmul.f32 %v1294_v56, %v1288_v8 }
 0x57d   :  { %v1298_v28 = vsub.f32 1.0, %v1293_v43  ;;  %v1300_v48 = vmul.f32 %v1293_v43, %v4275_v22 }
 0x57e   :  { %v1296_v40 = vadd.f32 %v1295_v32, %v4586_v47 }
 0x580   :  { %3376 = vtanh.f32 %v1296_v40 }
 0x58a   :  { %v3377_v57 = vpop.eup %3376 }
 0x58b   :  { %v1299_v36 = vmul.f32 %v3377_v57, %v1298_v28 }
 0x58d   :  { %v4327_v5 = vadd.f32 %v1300_v48, %v1299_v36 }
 0x58f   :  { %1370 = vmatmul.mubr.f32.vlgmr.msra.gmra.mrb[10].mxu0 %v4327_v5  ;;  %2669 = vmatmul.mubr.f32.vlgmr.msra.gmra.mrb[34].mxu1 %v4327_v5 }
 0x590   :  { %3188 = vmatpush1.bf16.msra.mxu0 %v3676_v34  ;;  %3219 = vmatpush3.bf16.msra.mxu1 %v3889_v55 }
 0x591   :  { %3190 = vmatprep.subr.bf16.mxu0 %v3679_v42  ;;  %3220 = vmatprep.subr.bf16.mxu1 %v4577_v0 }
 0x592   :  { %1531 = vmatprep.mubr.f32.mxu0 %v4578_v58  ;;  %2703 = vmatprep.mubr.msk.f32.mxu1 %vm3564_vm10, %v4578_v58 }
 0x594   :  { %3192 = vmatpush1.bf16.msra.mxu0 %v3684_v45  ;;  %3222 = vmatpush3.bf16.msra.mxu1 %v3903_v30 }
 0x595   :  { %3194 = vmatprep.subr.bf16.mxu0 %v3687_v49  ;;  %3223 = vmatprep.subr.bf16.mxu1 %v4577_v0 }
 0x598   :  { %3196 = vmatpush1.bf16.msra.mxu0 %v3697_v59  ;;  %3225 = vmatpush3.bf16.msra.mxu1 %v3917_v46 }
 0x599   :  { %3198 = vmatprep.subr.bf16.mxu0 %v3700_v62  ;;  %3226 = vmatprep.subr.bf16.mxu1 %v4577_v0 }
 0x59c   :  { %3200 = vmatpush1.bf16.msra.mxu0 %v3709_v9  ;;  %3228 = vmatpush3.bf16.msra.mxu1 %v3930_v6 }
 0x59d   :  { %3202 = vmatprep.subr.bf16.mxu0 %v3712_v12  ;;  %3229 = vmatprep.subr.bf16.mxu1 %v4577_v0 }
 0x5a0   :  { %3204 = vmatpush1.bf16.msra.mxu0 %v3724_v24  ;;  %3231 = vmatpush3.bf16.msra.mxu1 %v3938_v11 }
 0x5a1   :  { %3206 = vmatprep.subr.bf16.mxu0 %v3730_v27  ;;  %3232 = vmatprep.subr.bf16.mxu1 %v4577_v0 }
 0x5a4   :  { %3208 = vmatpush1.bf16.msra.mxu0 %v3745_v41  ;;  %3234 = vmatpush3.bf16.msra.mxu1 %v3944_v15 }
 0x5a5   :  { %3210 = vmatprep.subr.bf16.mxu0 %v3754_v50  ;;  %3235 = vmatprep.subr.bf16.mxu1 %v4577_v0 }
 0x5a8   :  { %3212 = vmatpush1.bf16.msra.mxu0 %v3769_v60  ;;  %3237 = vmatpush3.bf16.msra.mxu1 %v3948_v17 }
 0x5a9   :  { %3214 = vmatprep.subr.bf16.mxu0 %v3779_v3  ;;  %3238 = vmatprep.subr.bf16.mxu1 %v4577_v0 }
 0x5ac   :  { %3216 = vmatpush1.bf16.msra.mxu0 %v3794_v10  ;;  %3240 = vmatpush3.bf16.msra.mxu1 %v3952_v20 }
 0x5ad   :  { %3242 = vmatprep.subr.bf16.mxu0 %v3674_v33  ;;  %3273 = vmatprep.subr.bf16.mxu1 %v4577_v0 }
 0x662   :  { %v1371_v21 = vpop.f32.mrb[10].mxu0  ;;  %v1442_v23 = vpop.f32.mrb[34].mxu1 }
 0x663   :  { %v1446_v29 = vadd.f32 %v1371_v21, %v4016_v61  ;;  %v1373_v44 = vpop.f32.mrb[11].mxu0  ;;  %v2670_v16 = vpop.f32.mrb[35].mxu1  ;;  %v1456_v47 = vadd.f32 %v4116_v2, %v1442_v23  ;;  %v4588_v61 = vsel %vm4071_vm13, %v4069_v4, %v4067_v52 }
 0x664   :  { %v1451_v63 = vadd.f32 %v1373_v44, %v4587_v37  ;;  %v1819_v44 = vld [vmem:[#allocation9 + $0x38] sm:$0xff]  ;;  %v1820_v37 = vld [vmem:[#allocation9 + $0x40] sm:$0xff] }
 0x665   :  { %v1447_v8 = vmul.f32 0.5, %v1446_v29  ;;  %v1818_v29 = vld [vmem:[#allocation9 + $0x30] sm:$0xff] }
 0x666   :  { %v1452_v56 = vmul.f32 0.5, %v1451_v63  ;;  %v3309_v16 = vpack.c.bf16 %v1819_v44, %v1818_v29  ;;  %v1821_v63 = vld [vmem:[#allocation9 + $0x48] sm:$0xff] }
 0x667   :  { %3378 = vtanh.f32 %v1447_v8  ;;  %v3313_v8 = vpack.c.bf16 %v1821_v63, %v1820_v37 }
 0x668   :  { %3380 = vtanh.f32 %v1452_v56  ;;  %v1822_v56 = vld [vmem:[#allocation9 + $0x50] sm:$0xff] }
 0x671   :  { %v3379_v32 = vpop.eup %3378 }
 0x672   :  { %v1449_v33 = vadd.f32 1.0, %v3379_v32  ;;  %v3381_v38 = vpop.eup %3380  ;;  %v1823_v32 = vld [vmem:[#allocation9 + $0x58] sm:$0xff] }
 0x673   :  { %v1454_v31 = vadd.f32 1.0, %v3381_v38  ;;  %v1826_v38 = vld [vmem:[#allocation9 + $0x70] sm:$0xff] }
 0x674   :  { %v1450_v54 = vmul.f32 0.5, %v1449_v33  ;;  %v3317_v33 = vpack.c.bf16 %v1823_v32, %v1822_v56 }
 0x675   :  { %v1455_v53 = vmul.f32 0.5, %v1454_v31 }
 0x676   :  { %v1457_v40 = vmul.f32 %v1456_v47, %v1450_v54  ;;  %v1824_v54 = vld [vmem:[#allocation9 + $0x60] sm:$0xff]  ;;  %v1825_v47 = vld [vmem:[#allocation9 + $0x68] sm:$0xff] }
 0x677   :  { %v1460_v28 = vsub.f32 1.0, %v1455_v53  ;;  %v1462_v48 = vmul.f32 %v1455_v53, %v4327_v5 }
 0x678   :  { %v1458_v43 = vadd.f32 %v1457_v40, %v4588_v61  ;;  %v3321_v40 = vpack.c.bf16 %v1825_v47, %v1824_v54  ;;  %v1827_v61 = vld [vmem:[#allocation9 + $0x78] sm:$0xff] }
 0x67a   :  { %3382 = vtanh.f32 %v1458_v43  ;;  %v3325_v43 = vpack.c.bf16 %v1827_v61, %v1826_v38 }
 0x684   :  { %v3383_v57 = vpop.eup %3382 }
 0x685   :  { %v1461_v36 = vmul.f32 %v3383_v57, %v1460_v28 }
 0x687   :  { %v4379_v21 = vadd.f32 %v1462_v48, %v1461_v36  ;;  %v4591_v48 = vld [vmem:[#allocation24_spill] sm:$0xff] }
 0x689   :  { %1532 = vmatmul.mubr.f32.vlgmr.msra.gmra.mrb[12].mxu0 %v4379_v21  ;;  %2704 = vmatmul.mubr.f32.vlgmr.msra.gmra.mrb[36].mxu1 %v4379_v21 }
 0x68a   :  { %3244 = vmatpush1.bf16.msra.mxu0 %v3676_v34  ;;  %3275 = vmatpush3.bf16.msra.mxu1 %v3889_v55  ;;  %v4590_v55 = vsel %vm4071_vm13, %v4103_v51, %v4060_v35  ;;  %v1814_v51 = vld [vmem:[#allocation9 + $0x10] sm:$0xff]  ;;  %v1815_v35 = vld [vmem:[#allocation9 + $0x18] sm:$0xff] }
 0x68b   :  { %3246 = vmatprep.subr.bf16.mxu0 %v3679_v42  ;;  %3276 = vmatprep.subr.bf16.mxu1 %v4577_v0  ;;  %v3301_v4 = vpack.c.bf16 %v1815_v35, %v1814_v51  ;;  %v1800_v51 = vsel %vm488_vm11, %v4327_v5, %v4275_v22 }
 0x68c   :  { %1693 = vmatprep.mubr.f32.mxu0 %v4578_v58  ;;  %2738 = vmatprep.mubr.msk.f32.mxu1 %vm3564_vm10, %v4578_v58  ;;  %v1817_v58 = vld [vmem:[#allocation9 + $0x28] sm:$0xff] }
 0x68e   :  { %3248 = vmatpush1.bf16.msra.mxu0 %v3684_v45  ;;  %3278 = vmatpush3.bf16.msra.mxu1 %v3903_v30 }
 0x68f   :  { %3250 = vmatprep.subr.bf16.mxu0 %v3687_v49  ;;  %3279 = vmatprep.subr.bf16.mxu1 %v4577_v0 }
 0x692   :  { %3252 = vmatpush1.bf16.msra.mxu0 %v3697_v59  ;;  %3281 = vmatpush3.bf16.msra.mxu1 %v3917_v46 }
 0x693   :  { %3254 = vmatprep.subr.bf16.mxu0 %v3700_v62  ;;  %3282 = vmatprep.subr.bf16.mxu1 %v4577_v0  ;;  %v4589_v62 = vsel %vm3986_vm12, %v4026_v1, %v3978_v25  ;;  %v1812_v1 = vld [vmem:[#allocation9] sm:$0xff] }
 0x696   :  { %3256 = vmatpush1.bf16.msra.mxu0 %v3709_v9  ;;  %3284 = vmatpush3.bf16.msra.mxu1 %v3930_v6 }
 0x697   :  { %3258 = vmatprep.subr.bf16.mxu0 %v3712_v12  ;;  %3285 = vmatprep.subr.bf16.mxu1 %v4577_v0 }
 0x69a   :  { %3260 = vmatpush1.bf16.msra.mxu0 %v3724_v24  ;;  %3287 = vmatpush3.bf16.msra.mxu1 %v3938_v11 }
 0x69b   :  { %3262 = vmatprep.subr.bf16.mxu0 %v3730_v27  ;;  %3288 = vmatprep.subr.bf16.mxu1 %v4577_v0 }
 0x69e   :  { %3264 = vmatpush1.bf16.msra.mxu0 %v3745_v41  ;;  %3290 = vmatpush3.bf16.msra.mxu1 %v3944_v15 }
 0x69f   :  { %3266 = vmatprep.subr.bf16.mxu0 %v3754_v50  ;;  %3291 = vmatprep.subr.bf16.mxu1 %v4577_v0 }
 0x6a2   :  { %3268 = vmatpush1.bf16.msra.mxu0 %v3769_v60  ;;  %3293 = vmatpush3.bf16.msra.mxu1 %v3948_v17 }
 0x6a3   :  { %3270 = vmatprep.subr.bf16.mxu0 %v3779_v3  ;;  %3294 = vmatprep.subr.bf16.mxu1 %v4577_v0  ;;  %v1816_v0 = vld [vmem:[#allocation9 + $0x20] sm:$0xff] }
 0x6a4   :  { %v3305_v23 = vpack.c.bf16 %v1817_v58, %v1816_v0  ;;  %v1801_v0 = vsel %vm488_vm11, %v4379_v21, %v4223_v26 }
 0x6a6   :  { %3272 = vmatpush1.bf16.msra.mxu0 %v3794_v10  ;;  %3296 = vmatpush3.bf16.msra.mxu1 %v3952_v20 }
 0x75c   :  { %v1533_v34 = vpop.f32.mrb[12].mxu0  ;;  %v1604_v42 = vpop.f32.mrb[36].mxu1 }
 0x75d   :  { %v1608_v45 = vadd.f32 %v1533_v34, %v4034_v7  ;;  %v1535_v49 = vpop.f32.mrb[13].mxu0  ;;  %v2705_v59 = vpop.f32.mrb[37].mxu1  ;;  %v1618_v60 = vadd.f32 %v4116_v2, %v1604_v42  ;;  %v1813_v7 = vld [vmem:[#allocation9 + $0x8] sm:$0xff] }
 0x75e   :  { %v1613_v9 = vadd.f32 %v1535_v49, %v4589_v62  ;;  %v3297_v52 = vpack.c.bf16 %v1813_v7, %v1812_v1  ;;  %v4592_v34 = vld [vmem:[#allocation23_spill] sm:$0xff] }
 0x75f   :  { %v1609_v12 = vmul.f32 0.5, %v1608_v45  ;;  %v4593_v42 = vsel %vm3986_vm12, %v4591_v48, %v4592_v34 }
 0x760   :  { %v1614_v24 = vmul.f32 0.5, %v1613_v9  ;;  %3298 = vmatprep.subr.bf16.mxu0 %v3297_v52 }
 0x761   :  { %3384 = vtanh.f32 %v1609_v12 }
 0x762   :  { %3386 = vtanh.f32 %v1614_v24 }
 0x76b   :  { %v3385_v27 = vpop.eup %3384 }
 0x76c   :  { %v1611_v41 = vadd.f32 1.0, %v3385_v27  ;;  %v3387_v10 = vpop.eup %3386 }
 0x76d   :  { %v1616_v46 = vadd.f32 1.0, %v3387_v10 }
 0x76e   :  { %v1612_v50 = vmul.f32 0.5, %v1611_v41 }
 0x76f   :  { %v1617_v6 = vmul.f32 0.5, %v1616_v46 }
 0x770   :  { %v1619_v3 = vmul.f32 %v1618_v60, %v1612_v50  ;;  %v4595_v50 = vld [vmem:[#allocation25_spill] sm:$0xff] }
 0x771   :  { %v1622_v11 = vsub.f32 1.0, %v1617_v6  ;;  %v1624_v20 = vmul.f32 %v1617_v6, %v4379_v21 }
 0x772   :  { %v1620_v30 = vadd.f32 %v1619_v3, %v4590_v55 }
 0x774   :  { %3388 = vtanh.f32 %v1620_v30 }
 0x77e   :  { %v3389_v15 = vpop.eup %3388 }
 0x77f   :  { %v1623_v17 = vmul.f32 %v3389_v15, %v1622_v11 }
 0x781   :  { %v4429_v25 = vadd.f32 %v1624_v20, %v1623_v17  ;;  %v1798_v17 = vsel %vm488_vm11, %v4223_v26, %v4379_v21 }
 0x782   :  { %v1806_v7 = vmax.f32 %v1798_v17, 0.0 }
 0x783   :  { %1694 = vmatmul.mubr.f32.vlgmr.msra.gmra.mrb[14].mxu0 %v4429_v25  ;;  %2739 = vmatmul.mubr.f32.vlgmr.msra.gmra.mrb[38].mxu1 %v4429_v25  ;;  %v1797_v15 = vsel %vm488_vm11, %v4171_v19, %v4429_v25  ;;  %v1802_v58 = vsel %vm488_vm11, %v4429_v25, %v4171_v19 }
 0x784   :  { %3300 = vmatpush3.bf16.msra.mxu0 %v3297_v52  ;;  %v1805_v1 = vmax.f32 %v1797_v15, 0.0  ;;  %v1799_v52 = vsel %vm488_vm11, %v4275_v22, %v4327_v5  ;;  %v1810_v29 = vmax.f32 %v1802_v58, 0.0 }
 0x785   :  { %3302 = vmatprep.subr.bf16.mxu0 %v3301_v4  ;;  %v1807_v35 = vmax.f32 %v1799_v52, 0.0 }
 0x788   :  { %3304 = vmatpush3.bf16.msra.mxu0 %v3301_v4  ;;  %v1808_v4 = vmax.f32 %v1800_v51, 0.0 }
 0x789   :  { %3306 = vmatprep.subr.bf16.mxu0 %v3305_v23 }
 0x78c   :  { %3308 = vmatpush3.bf16.msra.mxu0 %v3305_v23  ;;  %v1809_v23 = vmax.f32 %v1801_v0, 0.0 }
 0x78d   :  { %3310 = vmatprep.subr.bf16.mxu0 %v3309_v16 }
 0x790   :  { %3312 = vmatpush3.bf16.msra.mxu0 %v3309_v16 }
 0x791   :  { %3314 = vmatprep.subr.bf16.mxu0 %v3313_v8 }
 0x794   :  { %3316 = vmatpush3.bf16.msra.mxu0 %v3313_v8 }
 0x795   :  { %3318 = vmatprep.subr.bf16.mxu0 %v3317_v33 }
 0x798   :  { %3320 = vmatpush3.bf16.msra.mxu0 %v3317_v33 }
 0x799   :  { %3322 = vmatprep.subr.bf16.mxu0 %v3321_v40 }
 0x79c   :  { %3324 = vmatpush3.bf16.msra.mxu0 %v3321_v40 }
 0x79d   :  { %3326 = vmatprep.subr.bf16.mxu0 %v3325_v43 }
 0x7a0   :  { %3328 = vmatpush3.bf16.msra.mxu0 %v3325_v43 }
 0x856   :  { %v1695_v31 = vpop.f32.mrb[14].mxu0  ;;  %v1766_v53 = vpop.f32.mrb[38].mxu1 }
 0x857   :  { %v1770_v28 = vadd.f32 %v1695_v31, %v4050_v18  ;;  %v1697_v57 = vpop.f32.mrb[15].mxu0  ;;  %v2740_v36 = vpop.f32.mrb[39].mxu1  ;;  %v1780_v24 = vadd.f32 %v4116_v2, %v1766_v53  ;;  %v4594_v18 = vld [vmem:[#allocation26_spill] sm:$0xff] }
 0x858   :  { %v1775_v45 = vadd.f32 %v1697_v57, %v4593_v42  ;;  %v4596_v39 = vsel %vm4071_vm13, %v4594_v18, %v4595_v50 }
 0x859   :  { %v1771_v49 = vmul.f32 0.5, %v1770_v28 }
 0x85a   :  { %v1776_v59 = vmul.f32 0.5, %v1775_v45 }
 0x85b   :  { %3390 = vtanh.f32 %v1771_v49 }
 0x85c   :  { %3392 = vtanh.f32 %v1776_v59 }
 0x865   :  { %v3391_v62 = vpop.eup %3390 }
 0x866   :  { %v1773_v9 = vadd.f32 1.0, %v3391_v62  ;;  %v3393_v41 = vpop.eup %3392 }
 0x867   :  { %v1778_v3 = vadd.f32 1.0, %v3393_v41 }
 0x868   :  { %v1774_v12 = vmul.f32 0.5, %v1773_v9 }
 0x869   :  { %v1779_v10 = vmul.f32 0.5, %v1778_v3 }
 0x86a   :  { %v1781_v27 = vmul.f32 %v1780_v24, %v1774_v12 }
 0x86b   :  { %v1784_v55 = vsub.f32 1.0, %v1779_v10  ;;  %v1786_v6 = vmul.f32 %v1779_v10, %v4429_v25 }
 0x86c   :  { %v1782_v60 = vadd.f32 %v1781_v27, %v4596_v39 }
 0x86e   :  { %3394 = vtanh.f32 %v1782_v60 }
 0x878   :  { %v3395_v30 = vpop.eup %3394 }
 0x879   :  { %v1785_v46 = vmul.f32 %v3395_v30, %v1784_v55 }
 0x87b   :  { %v1787_v11 = vadd.f32 %v1786_v6, %v1785_v46 }
 0x87d   :  { %1791 = vrot.lane.b32.xlu0 %v1787_v11, %s3565_s3  ;;  %v1796_v14 = vsel %vm488_vm11, %v4119_v13, %v1787_v11  ;;  %1789 = vst.msk [vmem:[#allocation13] sm:$0x3] %vm1788_vm14, %v1787_v11  ;;  %v1803_v22 = vsel %vm488_vm11, %v1787_v11, %v4119_v13 }
 0x87e   :  { %v1804_v20 = vmax.f32 %v1796_v14, 0.0  ;;  %v1811_v5 = vmax.f32 %v1803_v22, 0.0 }
 0x880   :  { %2773 = vmatprep.mubr.f32.mxu0 %v1804_v20 }
 0x881   :  { %2774 = vmatmul.mubr.f32.vlgmr.msra.gmra.mrb[16].mxu0 %v1805_v1 }
 0x882   :  { %2776 = vmatprep.mubr.f32.mxu0 %v1806_v7 }
 0x885   :  { %2777 = vmatmul.mubr.f32.gmra.mrb[18].mxu0 %v1807_v35 }
 0x886   :  { %2779 = vmatprep.mubr.f32.mxu0 %v1808_v4 }
 0x889   :  { %2780 = vmatmul.mubr.f32.gmra.mrb[20].mxu0 %v1809_v23 }
 0x88a   :  { %2782 = vmatprep.mubr.f32.mxu0 %v1810_v29 }
 0x88d   :  { %2783 = vmatmul.mubr.f32.gmra.mrb[22].mxu0 %v1811_v5 }
 0x8ef   :  { %v1792_v26 = vpop.permute.xlu0 %1791 }
 0x8f0   :  { %1795 = vst.msk [vmem:[#allocation13 + $0x2] sm:$0x3] %vm1788_vm14, %v1792_v26 }
 0x8f1   :  { %3507 = shalt.err (!%p3504_p13)
}
 0x8f2   :  { %s3508_s4 = scalar_lea.hbm %s4555_s7, 64 }
 0x8f3   :  { %p3509_p0 = scmp.ne.s32.totalorder %s4555_s7, %s3508_s4  ;;  %p3512_p1 = scmp.lt.u32.totalorder %s3508_s4, %s4555_s7 }
 0x8f5   :  { %p3514_p2 = pnand %p3512_p1, %p3509_p0 }
 0x8f7   :  { %3517 = shalt.err (!%p3514_p2)
}
 0x8f8   :  { %s3567_s30 = smov 32   ;;  %s3568_s9 = smov 2   ;;  %v3569_v13 = vmov 1966171168   ;;  %v2232_v25 = vld [vmem:[#allocation10] ss:$0 sm:$0xff] }
 0x8f9   :  { %2180 = dma.vmem_to_hbm [thread:$0]  %s2175_s25, 64, %s4555_s7, [#allocation14], %s3567_s30, %s3567_s30, %s3568_s9   ;;  %v1942_v19 = vunpack.c.l.s4 %v3569_v13  ;;  %v4598_v44 = vld [vmem:[#allocation21_spill] sm:$0xff]  ;;  %vm1965_vm15 = vcmask 319488  }
 0x8fa   :  { %s3570_s7 = smov [#allocation12]  }
 0x8fb   :  { %v1943_v21 = vunpack.c.0.s8 %v1942_v19  ;;  %s2162_s12 = sshll.u32 %s3570_s7, 4  ;;  %s2163_s12 = int_to_ptr.vmem [resolvable:$true] %s2162_s12 }
 0x8fc   :  { %s3518_s13 = scalar_lea.vmem %s2163_s12, 256  ;;  %p3523_p4 = scmp.lt.s32.totalorder %s2163_s12, %s2163_s12 }
 0x8fd   :  { %v4491_v16 = vsub.s32 %v1943_v21, %v4598_v44  ;;  %p3519_p3 = scmp.ne.s32.totalorder %s2163_s12, %s3518_s13  ;;  %p3524_p5 = scmp.lt.s32.totalorder %s3518_s13, %s3518_s13 }
 0x8ff   :  { %p3525_p6 = por %p3524_p5, %p3523_p4 }
 0x901   :  { %p3526_p7 = pnand %p3525_p6, %p3519_p3 }
 0x954   :  { %v2775_v37 = vpop.f32.mrb[16].mxu0 }
 0x955   :  { %v1907_v63 = vadd.f32 %v2775_v37, %v2232_v25  ;;  %v1901_v8 = vpop.f32.mrb[17].mxu0 }
 0x956   :  { %v1902_v56 = vadd.f32 %v2232_v25, %v1901_v8 }
 0x957   :  { %v1975_v32 = vrot.slane %v1907_v63, %v4491_v16 }
 0x958   :  { %v1947_v33 = vrot.slane %v1902_v56, %v4491_v16  ;;  %v2778_v54 = vpop.f32.mrb[18].mxu0 }
 0x959   :  { %v1976_v47 = vcombine.high %v1975_v32, %v1975_v32  ;;  %v1983_v40 = vrot.slane %v1975_v32, %v4491_v16  ;;  %v1917_v38 = vadd.f32 %v2778_v54, %v2232_v25  ;;  %v1911_v61 = vpop.f32.mrb[19].mxu0 }
 0x95a   :  { %v1948_v43 = vcombine.high %v1947_v33, %v1947_v33  ;;  %v1955_v31 = vrot.slane %v1947_v33, %v4491_v16  ;;  %v1912_v53 = vadd.f32 %v2232_v25, %v1911_v61 }
 0x95b   :  { %v1990_v28 = vrot.slane %v1976_v47, %v4491_v16  ;;  %1993 = vst.msk [vmem:[#allocation12 + $0x1] sm:$0x1] %vm1965_vm15, %v1983_v40  ;;  %v2029_v57 = vrot.slane %v1917_v38, %v4491_v16 }
 0x95c   :  { %v1962_v36 = vrot.slane %v1948_v43, %v4491_v16  ;;  %1966 = vst.msk [vmem:[#allocation12] sm:$0x1] %vm1965_vm15, %v1955_v31  ;;  %v2002_v48 = vrot.slane %v1912_v53, %v4491_v16  ;;  %v2781_v34 = vpop.f32.mrb[20].mxu0 }
 0x95d   :  { %1994 = vst.msk [vmem:[#allocation12 + $0x9] sm:$0x1] %vm1965_vm15, %v1990_v28  ;;  %v2030_v42 = vcombine.high %v2029_v57, %v2029_v57  ;;  %v2037_v45 = vrot.slane %v2029_v57, %v4491_v16  ;;  %v1927_v49 = vadd.f32 %v2781_v34, %v2232_v25  ;;  %v1921_v59 = vpop.f32.mrb[21].mxu0 }
 0x95e   :  { %1967 = vst.msk [vmem:[#allocation12 + $0x8] sm:$0x1] %vm1965_vm15, %v1962_v36  ;;  %v2003_v62 = vcombine.high %v2002_v48, %v2002_v48  ;;  %v2010_v9 = vrot.slane %v2002_v48, %v4491_v16  ;;  %v1922_v12 = vadd.f32 %v2232_v25, %v1921_v59 }
 0x95f   :  { %v2044_v24 = vrot.slane %v2030_v42, %v4491_v16  ;;  %2047 = vst.msk [vmem:[#allocation12 + $0x3] sm:$0x1] %vm1965_vm15, %v2037_v45  ;;  %v2083_v27 = vrot.slane %v1927_v49, %v4491_v16 }
 0x960   :  { %v2017_v41 = vrot.slane %v2003_v62, %v4491_v16  ;;  %2020 = vst.msk [vmem:[#allocation12 + $0x2] sm:$0x1] %vm1965_vm15, %v2010_v9  ;;  %v2056_v18 = vrot.slane %v1922_v12, %v4491_v16  ;;  %v2784_v50 = vpop.f32.mrb[22].mxu0 }
 0x961   :  { %2048 = vst.msk [vmem:[#allocation12 + $0xb] sm:$0x1] %vm1965_vm15, %v2044_v24  ;;  %v2084_v39 = vcombine.high %v2083_v27, %v2083_v27  ;;  %v2091_v60 = vrot.slane %v2083_v27, %v4491_v16  ;;  %v1937_v3 = vadd.f32 %v2784_v50, %v2232_v25  ;;  %v1931_v10 = vpop.f32.mrb[23].mxu0 }
 0x962   :  { %2021 = vst.msk [vmem:[#allocation12 + $0xa] sm:$0x1] %vm1965_vm15, %v2017_v41  ;;  %v2057_v55 = vcombine.high %v2056_v18, %v2056_v18  ;;  %v2064_v30 = vrot.slane %v2056_v18, %v4491_v16  ;;  %v1932_v46 = vadd.f32 %v2232_v25, %v1931_v10 }
 0x963   :  { %v2098_v6 = vrot.slane %v2084_v39, %v4491_v16  ;;  %2101 = vst.msk [vmem:[#allocation12 + $0x5] sm:$0x1] %vm1965_vm15, %v2091_v60  ;;  %v2137_v11 = vrot.slane %v1937_v3, %v4491_v16 }
 0x964   :  { %v2071_v2 = vrot.slane %v2057_v55, %v4491_v16  ;;  %2074 = vst.msk [vmem:[#allocation12 + $0x4] sm:$0x1] %vm1965_vm15, %v2064_v30  ;;  %v2110_v15 = vrot.slane %v1932_v46, %v4491_v16 }
 0x965   :  { %2102 = vst.msk [vmem:[#allocation12 + $0xd] sm:$0x1] %vm1965_vm15, %v2098_v6  ;;  %v2138_v14 = vcombine.high %v2137_v11, %v2137_v11  ;;  %v2145_v17 = vrot.slane %v2137_v11, %v4491_v16 }
 0x966   :  { %2075 = vst.msk [vmem:[#allocation12 + $0xc] sm:$0x1] %vm1965_vm15, %v2071_v2  ;;  %v2111_v20 = vcombine.high %v2110_v15, %v2110_v15  ;;  %v2118_v1 = vrot.slane %v2110_v15, %v4491_v16 }
 0x967   :  { %v2152_v7 = vrot.slane %v2138_v14, %v4491_v16  ;;  %2155 = vst.msk [vmem:[#allocation12 + $0x7] sm:$0x1] %vm1965_vm15, %v2145_v17 }
 0x968   :  { %v2125_v52 = vrot.slane %v2111_v20, %v4491_v16  ;;  %2128 = vst.msk [vmem:[#allocation12 + $0x6] sm:$0x1] %vm1965_vm15, %v2118_v1 }
 0x969   :  { %2156 = vst.msk [vmem:[#allocation12 + $0xf] sm:$0x1] %vm1965_vm15, %v2152_v7 }
 0x96a   :  { %2129 = vst.msk [vmem:[#allocation12 + $0xe] sm:$0x1] %vm1965_vm15, %v2125_v52 }
 0x96b   :  { %3529 = shalt.err (!%p3526_p7)
}
 0x96c   :  { %s3530_s16 = scalar_lea.hbm %s4554_s6, 256 }
 0x96d   :  { %p3531_p8 = scmp.ne.s32.totalorder %s4554_s6, %s3530_s16  ;;  %p3534_p9 = scmp.lt.u32.totalorder %s3530_s16, %s4554_s6 }
 0x96f   :  { %p3536_p10 = pnand %p3534_p9, %p3531_p8 }
 0x971   :  { %3539 = shalt.err (!%p3536_p10)
}
 0x972   :  { %2168 = dma.vmem_to_hbm [thread:$0]  %s2163_s12, 256, %s4554_s6, [#allocation6], %s3558_s1, %s3558_s1, %s3559_s8  }
 0x973   :  { %3548 = dma.done.wait [#allocation6], 256  }
 0x974   :  { %3549 = vsyncadd [#allocation6], 4294967040 }
 0x975   :  { %3550 = dma.done.wait [#allocation14], 64  }
 0x976   :  { %3551 = vsyncadd [#allocation14], 4294967232 }
 0x977   :  { %2187 = vsyncpa [#allocation5], 1 }
 0x978   :  { %2188 = vsyncpa [#allocation8], 1 }
 0x979   :  { %2189 = vsyncpa [#allocation11], 1 }
 0x97a   :  { %2190 = vsyncpa [#allocation6], 1 }
 0x97b   :  { %2191 = vsyncpa [#allocation14], 1 }

</bundles_post_ra>
